<compile_context>
chip_gen: v7x
topology: tpu7x:2x2x1
jax: 0.10.0
libtpu: 0.0.40
codegen_flags: <defaults>
</compile_context>

<pallas_src>
import functools
import math

import jax
import jax.numpy as jnp
from jax import lax
from jax.experimental import pallas as pl
from jax.experimental.pallas import tpu as pltpu


# ----------------------------------------------------------------------------
# Fused decoder kernel (bidirectional LSTM + output LSTM, one batch tile).
# ----------------------------------------------------------------------------
def _decoder_kernel(z_ref, w_ih1_ref, b1_ref, w_hh1_ref,
                    w_ih2_ref, w_hh2_ref, b2_ref,
                    out_ref, xp2_sc,
                    *, T, H, split_rec, unrolled, dot_dtype):
    # z_ref    : (B, L)            latent (batch tile)
    # w_ih1_ref: (L, 8H)           layer-1 input weights (fused-interleaved or [fwd|bwd])
    # b1_ref   : (1, 8H)           layer-1 merged biases (same layout as w_ih1)
    # w_hh1_ref: (2H, 8H) or (2H, 4H)  layer-1 recurrent weights (fused / split)
    # w_ih2_ref: (2H, 4P)          layer-2 input weights ([fwd rows ; bwd rows])
    # w_hh2_ref: (P, 4P)           layer-2 recurrent weights
    # b2_ref   : (1, 4P)           layer-2 merged biases
    # out_ref  : (T, B, P)         time-major output block
    # xp2_sc   : (T, B, 4P) VMEM   layer-2 gate pre-activations (accumulated)
    # Gate order everywhere: (i, f, o, g).
    f32 = jnp.float32
    B = z_ref.shape[0]
    P = w_hh2_ref.shape[0]
    H2 = 2 * H

    def mm(a, w):
        # Weights already arrive in dot_dtype; activations cast per matmul,
        # accumulation stays f32.
        return jnp.dot(a.astype(dot_dtype), w, preferred_element_type=f32)

    def lstm_cell(gates, c, n):
        # gates: (B, 4n) in (i, f, o, g) order.
        # One sigmoid over the contiguous i/f/o region, one tanh over g; no
        # full-width duplicated activation copies.
        sg = jax.nn.sigmoid(gates[:, :3 * n])
        gg = jnp.tanh(gates[:, 3 * n:])
        c = sg[:, n:2 * n] * c + sg[:, 0:n] * gg
        h = sg[:, 2 * n:3 * n] * jnp.tanh(c)
        return h, c

    # ---- Hoisted, time-invariant work (off the serial critical path) -------
    # NOTE: the single hoisted xp1 and the "backward time-flip is a no-op"
    # trick are valid ONLY because the layer-1 input is z repeated over the
    # window (time-invariant). Do not reuse for time-varying decoder inputs.
    xp1 = mm(z_ref[...], w_ih1_ref[...]) + b1_ref[...]          # (B, 8H)
    w2_f = w_ih2_ref[0:H, :]                                    # (H, 4P)
    w2_b = w_ih2_ref[H:H2, :]                                   # (H, 4P)
    w_hh2 = w_hh2_ref[...]                                      # (P, 4P)
    b2 = b2_ref[...]                                            # (1, 4P)
    xp2_sc[...] = jnp.zeros((T, B, 4 * P), f32)

    # ---- Layer 1: bidirectional LSTM over the window ------------------------
    if not split_rec:
        # 2H <= 128: one lane-dense block-diagonal recurrent matmul per step;
        # state is [h_fwd | h_bwd], gates are gate-interleaved [fwd | bwd].
        w_hh1 = w_hh1_ref[...]                                  # (2H, 8H)

        def step1(t, carry):
            h1, c1 = carry                                      # (B, 2H)
            h1, c1 = lstm_cell(xp1 + mm(h1, w_hh1), c1, H2)
            # Fold the layer-2 input projection under the recurrence (the MXU
            # is otherwise idle between serial recurrent pushes).
            xp2_sc[t] += mm(h1[:, 0:H], w2_f)                   # fwd half @ time t
            xp2_sc[T - 1 - t] += mm(h1[:, H:H2], w2_b)          # bwd half @ time T-1-t
            return h1, c1

        carry1 = (jnp.zeros((B, H2), f32), jnp.zeros((B, H2), f32))
    else:
        # 2H > 128: zero blocks would waste MXU cycles -> two dense matmuls.
        w_hh1f = w_hh1_ref[0:H, :]                              # (H, 4H)
        w_hh1b = w_hh1_ref[H:H2, :]                              # (H, 4H)
        H4 = 4 * H

        def step1(t, carry):
            h_f, c_f, h_b, c_b = carry                          # each (B, H)
            h_f, c_f = lstm_cell(xp1[:, :H4] + mm(h_f, w_hh1f), c_f, H)
            h_b, c_b = lstm_cell(xp1[:, H4:] + mm(h_b, w_hh1b), c_b, H)
            xp2_sc[t] += mm(h_f, w2_f)
            xp2_sc[T - 1 - t] += mm(h_b, w2_b)
            return h_f, c_f, h_b, c_b

        carry1 = (jnp.zeros((B, H), f32), jnp.zeros((B, H), f32),
                  jnp.zeros((B, H), f32), jnp.zeros((B, H), f32))

    # ---- Layer 2: output LSTM -----------------------------------------------
    def step2(t, carry):
        h2, c2 = carry                                          # (B, P)
        h2, c2 = lstm_cell(xp2_sc[t] + b2 + mm(h2, w_hh2), c2, P)
        out_ref[t] = h2.astype(out_ref.dtype)
        return h2, c2

    carry2 = (jnp.zeros((B, P), f32), jnp.zeros((B, P), f32))

    if unrolled:
        # Small T: full static unroll (all indices static).
        for t in range(T):
            carry1 = step1(t, carry1)
        for t in range(T):
            carry2 = step2(t, carry2)
    else:
        # Large T: rolled loops bound live ranges (less spill); modest unroll
        # keeps LLO scheduling visibility across step boundaries.
        carry1 = lax.fori_loop(0, T, step1, carry1, unroll=4)
        carry2 = lax.fori_loop(0, T, step2, carry2, unroll=4)


# ----------------------------------------------------------------------------
# Parameter construction (deterministic, mirrors torch.nn.LSTM init ranges).
# Weights stored pre-transposed as (Din, 4H) / (H, 4H) in torch gate order
# (i, f, g, o); biases merged (b_ih + b_hh).
# ----------------------------------------------------------------------------
def _make_lstm_params(key, in_dim, hidden):
    scale = 1.0 / math.sqrt(hidden)
    ks = jax.random.split(key, 4)
    w_ih = jax.random.uniform(ks[0], (in_dim, 4 * hidden), jnp.float32, -scale, scale)
    w_hh = jax.random.uniform(ks[1], (hidden, 4 * hidden), jnp.float32, -scale, scale)
    b_ih = jax.random.uniform(ks[2], (4 * hidden,), jnp.float32, -scale, scale)
    b_hh = jax.random.uniform(ks[3], (4 * hidden,), jnp.float32, -scale, scale)
    b = (b_ih + b_hh).reshape(1, 4 * hidden)
    return dict(w_ih=w_ih, w_hh=w_hh, b=b)


def init_decoder_params(key, input_size, hidden_size, latent_dim):
    k1, k2, k3 = jax.random.split(key, 3)
    return dict(
        h_fwd=_make_lstm_params(k1, latent_dim, hidden_size),     # lstm_to_hidden fwd
        h_bwd=_make_lstm_params(k2, latent_dim, hidden_size),     # lstm_to_hidden bwd
        out=_make_lstm_params(k3, 2 * hidden_size, input_size),   # lstm_to_output
    )


# ----------------------------------------------------------------------------
# Decoder forward (matches the PyTorch module semantics, batch_first output).
# ----------------------------------------------------------------------------
def decoder_forward(params, z, window_size, *, batch_tile=8,
                    compute_dtype=jnp.float32, unroll_threshold=32):
    assert z.ndim == 2, "Decoder consumes a (batch, latent_dim) latent z"
    z = z.astype(jnp.float32)
    B0, L = z.shape
    H = params["h_fwd"]["w_hh"].shape[0]
    P = params["out"]["w_hh"].shape[0]
    T = int(window_size)

    split_rec = (2 * H) > 128            # fused block-diagonal matmul only while 2H fits one K tile
    unrolled = T <= unroll_threshold

    # ---- gate reorder (i,f,g,o) -> (i,f,o,g) so sigmoid covers a contiguous
    #      3/4 of the gate width and tanh the trailing 1/4. -------------------
    def reorder(a, n):
        return jnp.concatenate(
            [a[..., 0:2 * n], a[..., 3 * n:4 * n], a[..., 2 * n:3 * n]], axis=-1)

    def interleave(a_f, a_b, n):
        # per-gate [fwd | bwd] interleave -> matches the [h_fwd | h_bwd] state.
        parts = []
        for k in range(4):
            parts.append(a_f[..., k * n:(k + 1) * n])
            parts.append(a_b[..., k * n:(k + 1) * n])
        return jnp.concatenate(parts, axis=-1)

    w_ih_f = reorder(params["h_fwd"]["w_ih"], H)
    w_ih_b = reorder(params["h_bwd"]["w_ih"], H)
    b_f = reorder(params["h_fwd"]["b"], H)
    b_b = reorder(params["h_bwd"]["b"], H)
    w_hh_f = reorder(params["h_fwd"]["w_hh"], H)
    w_hh_b = reorder(params["h_bwd"]["w_hh"], H)

    if not split_rec:
        w_ih1 = interleave(w_ih_f, w_ih_b, H)                         # (L, 8H)
        b1 = interleave(b_f, b_b, H)                                  # (1, 8H)
        zero = jnp.zeros_like(w_hh_f)
        w_hh1 = jnp.concatenate([interleave(w_hh_f, zero, H),
                                 interleave(zero, w_hh_b, H)], axis=0)  # (2H, 8H)
    else:
        w_ih1 = jnp.concatenate([w_ih_f, w_ih_b], axis=-1)            # (L, 8H) = [fwd|bwd]
        b1 = jnp.concatenate([b_f, b_b], axis=-1)                     # (1, 8H)
        w_hh1 = jnp.concatenate([w_hh_f, w_hh_b], axis=0)             # (2H, 4H)

    w_ih2 = reorder(params["out"]["w_ih"], P)                         # (2H, 4P)
    w_hh2 = reorder(params["out"]["w_hh"], P)                         # (P, 4P)
    b2 = reorder(params["out"]["b"], P)                               # (1, 4P)

    # bf16 weights (v6e/v7x MXU) keep f32 accumulation and f32 gate/cell math.
    cdt = jnp.dtype(compute_dtype)
    w_ih1 = w_ih1.astype(cdt)
    w_hh1 = w_hh1.astype(cdt)
    w_ih2 = w_ih2.astype(cdt)
    w_hh2 = w_hh2.astype(cdt)
    b1 = b1.astype(jnp.float32)
    b2 = b2.astype(jnp.float32)

    # ---- batch padding + batch-tile grid ------------------------------------
    # Batch is the only lever on the serial recurrence: pad it to fill vreg
    # sublanes (multiple of 8) and give each batch tile its own grid program so
    # v7x's two TensorCores split the batch (no-op on v5e/v6e's single TC).
    TB = max(8, -(-int(batch_tile) // 8) * 8)
    TB = min(TB, -(-B0 // 8) * 8)
    B_pad = -(-B0 // TB) * TB
    if B_pad != B0:
        z = jnp.concatenate([z, jnp.zeros((B_pad - B0, L), z.dtype)], axis=0)
    n_tiles = B_pad // TB

    def wspec(a):
        nd = a.ndim
        return pl.BlockSpec(a.shape, lambda i: (0,) * nd)   # broadcast to every tile

    # ---- advisory cost estimate ----------------------------------------------
    if split_rec:
        rec1_flops = 2 * (2 * TB * H * 4 * H)            # two (TB,H)@(H,4H) per step
    else:
        rec1_flops = 2 * TB * (2 * H) * (8 * H)          # one (TB,2H)@(2H,8H) per step
    proj2_flops = 2 * (2 * TB * H * 4 * P)               # folded fwd+bwd layer-2 projections
    rec2_flops = 2 * TB * P * (4 * P)
    flops = n_tiles * (T * (rec1_flops + proj2_flops + rec2_flops)
                       + 2 * TB * L * (8 * H))
    transcendentals = n_tiles * T * TB * (10 * H + 5 * P)
    w_bytes = sum(int(a.size) * a.dtype.itemsize
                  for a in (w_ih1, b1, w_hh1, w_ih2, w_hh2, b2))
    bytes_accessed = int(z.size) * 4 + n_tiles * w_bytes + T * B_pad * P * 4

    kernel = functools.partial(_decoder_kernel, T=T, H=H, split_rec=split_rec,
                               unrolled=unrolled, dot_dtype=cdt)

    out_tbp = pl.pallas_call(
        kernel,
        out_shape=jax.ShapeDtypeStruct((T, B_pad, P), jnp.float32),
        grid=(n_tiles,),
        in_specs=[pl.BlockSpec((TB, L), lambda i: (i, 0)),
                  wspec(w_ih1), wspec(b1), wspec(w_hh1),
                  wspec(w_ih2), wspec(w_hh2), wspec(b2)],
        out_specs=pl.BlockSpec((T, TB, P), lambda i: (0, i, 0)),
        scratch_shapes=[pltpu.VMEM((T, TB, 4 * P), jnp.float32)],
        compiler_params=pltpu.CompilerParams(
            dimension_semantics=("parallel",),
            vmem_limit_bytes=32 * 1024 * 1024),
        cost_estimate=pl.CostEstimate(flops=flops,
                                      transcendentals=transcendentals,
                                      bytes_accessed=bytes_accessed),
    )(z, w_ih1, b1, w_hh1, w_ih2, w_hh2, b2)

    # (T, B_pad, P) time-major -> (B, T, P) batch_first; drop batch padding.
    return jnp.transpose(out_tbp, (1, 0, 2))[:B0]


# ----------------------------------------------------------------------------
# Pure-JAX reference (lax.scan) for correctness checking.
# ----------------------------------------------------------------------------
def _lstm_ref(x_btd, w_ih, w_hh, b):
    B = x_btd.shape[0]
    H = w_hh.shape[0]

    def step(carry, x_t):
        h, c = carry
        gates = x_t @ w_ih + h @ w_hh + b
        i = jax.nn.sigmoid(gates[:, 0 * H:1 * H])
        f = jax.nn.sigmoid(gates[:, 1 * H:2 * H])
        g = jnp.tanh(gates[:, 2 * H:3 * H])
        o = jax.nn.sigmoid(gates[:, 3 * H:4 * H])
        c = f * c + i * g
        h = o * jnp.tanh(c)
        return (h, c), h

    init = (jnp.zeros((B, H), jnp.float32), jnp.zeros((B, H), jnp.float32))
    _, ys = lax.scan(step, init, jnp.transpose(x_btd, (1, 0, 2)))
    return jnp.transpose(ys, (1, 0, 2))


def decoder_forward_ref(params, z, window_size):
    latent_z = jnp.broadcast_to(
        z[:, None, :], (z.shape[0], window_size, z.shape[1]))
    fwd = _lstm_ref(latent_z, params["h_fwd"]["w_ih"],
                    params["h_fwd"]["w_hh"], params["h_fwd"]["b"])
    bwd = _lstm_ref(latent_z[:, ::-1, :], params["h_bwd"]["w_ih"],
                    params["h_bwd"]["w_hh"], params["h_bwd"]["b"])[:, ::-1, :]
    hid = jnp.concatenate([fwd, bwd], axis=-1)
    return _lstm_ref(hid, params["out"]["w_ih"],
                     params["out"]["w_hh"], params["out"]["b"])


if __name__ == "__main__":
    def check(name, input_size, hidden_size, latent_dim, window_size, batch,
              compute_dtype, tol):
        key = jax.random.PRNGKey(0)
        kp, kz = jax.random.split(key)
        params = init_decoder_params(kp, input_size, hidden_size, latent_dim)
        z = jax.random.normal(kz, (batch, latent_dim), jnp.float32)
        run = jax.jit(functools.partial(decoder_forward,
                                        window_size=window_size,
                                        compute_dtype=compute_dtype))
        out = jax.block_until_ready(run(params, z))
        assert out.shape == (batch, window_size, input_size), (name, out.shape)
        ref = decoder_forward_ref(params, z, window_size)
        err = float(jnp.max(jnp.abs(out - ref)))
        assert err < tol, (name, err)

    # Fused block-diagonal recurrence (2H <= 128), static unroll, padded batch
    # (12 -> 16) exercising a 2-tile parallel grid.
    check("fused_f32", 8, 16, 8, 8, 12, jnp.float32, 5e-5)
    # Split recurrence (2H = 160 > 128) + rolled fori_loop path (T = 40 > 32).
    check("split_f32", 8, 80, 8, 40, 8, jnp.float32, 1e-3)
    # bf16 matmul operands (v6e/v7x MXU path), f32 accumulation/gate/cell math.
    check("bf16_matmul", 8, 16, 8, 8, 12, jnp.bfloat16, 1e-1)

    print("KERNEL_OK")
</pallas_src>

<mosaic_0001>
module attributes {stable_mosaic.version = 11 : i64} {
  func.func @_decoder_kernel(%arg0: i32, %arg1: memref<8x8xf32, #tpu.memory_space<vmem>>, %arg2: memref<8x128xf32, #tpu.memory_space<vmem>>, %arg3: memref<1x128xf32, #tpu.memory_space<vmem>>, %arg4: memref<32x128xf32, #tpu.memory_space<vmem>>, %arg5: memref<32x32xf32, #tpu.memory_space<vmem>>, %arg6: memref<8x32xf32, #tpu.memory_space<vmem>>, %arg7: memref<1x32xf32, #tpu.memory_space<vmem>>, %arg8: memref<8x8x8xf32, #tpu.memory_space<vmem>>, %arg9: memref<8x8x32xf32, #tpu.memory_space<vmem>>) attributes {dimension_semantics = [#tpu.dimension_semantics<parallel>], iteration_bounds = array<i64: 2>, scalar_prefetch = 0 : i64, scratch_operands = 1 : i64, tpu.core_type = #tpu.core_type<tc>, window_params = [{transform_indices = @transform_0, window_bounds = array<i64: 8, 8>}, {pipeline_mode = #tpu.pipeline_mode<synchronous>, transform_indices = @transform_1, window_bounds = array<i64: 8, 128>}, {pipeline_mode = #tpu.pipeline_mode<synchronous>, transform_indices = @transform_2, window_bounds = array<i64: 1, 128>}, {pipeline_mode = #tpu.pipeline_mode<synchronous>, transform_indices = @transform_3, window_bounds = array<i64: 32, 128>}, {pipeline_mode = #tpu.pipeline_mode<synchronous>, transform_indices = @transform_4, window_bounds = array<i64: 32, 32>}, {pipeline_mode = #tpu.pipeline_mode<synchronous>, transform_indices = @transform_5, window_bounds = array<i64: 8, 32>}, {pipeline_mode = #tpu.pipeline_mode<synchronous>, transform_indices = @transform_6, window_bounds = array<i64: 1, 32>}, {transform_indices = @transform_7, window_bounds = array<i64: 8, 8, 8>}]} {
    %c0 = arith.constant 0 : index
    %c0_0 = arith.constant 0 : index
    %0 = vector.load %arg1[%c0, %c0_0] : memref<8x8xf32, #tpu.memory_space<vmem>>, vector<8x8xf32>
    %c0_1 = arith.constant 0 : index
    %c0_2 = arith.constant 0 : index
    %1 = vector.load %arg2[%c0_1, %c0_2] : memref<8x128xf32, #tpu.memory_space<vmem>>, vector<8x128xf32>
    %cst = arith.constant dense<0.000000e+00> : vector<8x128xf32>
    %2 = tpu.matmul %0, %1, %cst {dimension_numbers = #tpu.dot_dimension_numbers<[1], [0], [0], [1], [0, 0, 1, 1], [], []>} : vector<8x8xf32>, vector<8x128xf32>, vector<8x128xf32> -> vector<8x128xf32>
    %c0_3 = arith.constant 0 : index
    %c0_4 = arith.constant 0 : index
    %3 = vector.load %arg3[%c0_3, %c0_4] : memref<1x128xf32, #tpu.memory_space<vmem>>, vector<1x128xf32>
    %4 = vector.broadcast %3 : vector<1x128xf32> to vector<8x128xf32>
    %5 = arith.addf %2, %4 : vector<8x128xf32>
    %c0_5 = arith.constant 0 : index
    %c0_6 = arith.constant 0 : index
    %6 = vector.load %arg5[%c0_5, %c0_6] : memref<32x32xf32, #tpu.memory_space<vmem>>, vector<16x32xf32>
    %c16 = arith.constant 16 : index
    %c0_7 = arith.constant 0 : index
    %7 = vector.load %arg5[%c16, %c0_7] : memref<32x32xf32, #tpu.memory_space<vmem>>, vector<16x32xf32>
    %c0_8 = arith.constant 0 : index
    %c0_9 = arith.constant 0 : index
    %8 = vector.load %arg6[%c0_8, %c0_9] : memref<8x32xf32, #tpu.memory_space<vmem>>, vector<8x32xf32>
    %c0_10 = arith.constant 0 : index
    %c0_11 = arith.constant 0 : index
    %9 = vector.load %arg7[%c0_10, %c0_11] : memref<1x32xf32, #tpu.memory_space<vmem>>, vector<1x32xf32>
    %cst_12 = arith.constant 0.000000e+00 : f32
    %10 = vector.broadcast %cst_12 : f32 to vector<8x8x32xf32>
    %c0_13 = arith.constant 0 : index
    %c0_14 = arith.constant 0 : index
    %c0_15 = arith.constant 0 : index
    %11 = vector.load %arg9[%c0_13, %c0_14, %c0_15] : memref<8x8x32xf32, #tpu.memory_space<vmem>>, vector<8x8x32xf32>
    tpu.vector_store %arg9[%c0_13, %c0_14, %c0_15], %10 {strides = array<i32>} : memref<8x8x32xf32, #tpu.memory_space<vmem>>, vector<8x8x32xf32>,
    %c0_16 = arith.constant 0 : index
    %c0_17 = arith.constant 0 : index
    %12 = vector.load %arg4[%c0_16, %c0_17] : memref<32x128xf32, #tpu.memory_space<vmem>>, vector<32x128xf32>
    %cst_18 = arith.constant 0.000000e+00 : f32
    %13 = vector.broadcast %cst_18 : f32 to vector<8x32xf32>
    %cst_19 = arith.constant 0.000000e+00 : f32
    %14 = vector.broadcast %cst_19 : f32 to vector<8x32xf32>
    %cst_20 = arith.constant 0.000000e+00 : f32
    %15 = vector.broadcast %cst_20 : f32 to vector<8x8xf32>
    %cst_21 = arith.constant 0.000000e+00 : f32
    %16 = vector.broadcast %cst_21 : f32 to vector<8x8xf32>
    %cst_22 = arith.constant dense<0.000000e+00> : vector<8x128xf32>
    %17 = tpu.matmul %13, %12, %cst_22 {dimension_numbers = #tpu.dot_dimension_numbers<[1], [0], [0], [1], [0, 0, 1, 1], [], []>} : vector<8x32xf32>, vector<32x128xf32>, vector<8x128xf32> -> vector<8x128xf32>
    %18 = arith.addf %5, %17 : vector<8x128xf32>
    %19 = vector.extract_strided_slice %18 {offsets = [0, 0], sizes = [8, 96], strides = [1, 1]} : vector<8x128xf32> to vector<8x96xf32>
    %20 = arith.negf %19 : vector<8x96xf32>
    %21 = math.exp %20 : vector<8x96xf32>
    %cst_23 = arith.constant 1.000000e+00 : f32
    %22 = vector.broadcast %cst_23 : f32 to vector<8x96xf32>
    %23 = arith.addf %22, %21 : vector<8x96xf32>
    %24 = arith.divf %22, %23 : vector<8x96xf32>
    %25 = vector.extract_strided_slice %18 {offsets = [0, 96], sizes = [8, 32], strides = [1, 1]} : vector<8x128xf32> to vector<8x32xf32>
    %26 = math.tanh %25 : vector<8x32xf32>
    %27 = vector.extract_strided_slice %24 {offsets = [0, 32], sizes = [8, 32], strides = [1, 1]} : vector<8x96xf32> to vector<8x32xf32>
    %28 = arith.mulf %27, %14 : vector<8x32xf32>
    %29 = vector.extract_strided_slice %24 {offsets = [0, 0], sizes = [8, 32], strides = [1, 1]} : vector<8x96xf32> to vector<8x32xf32>
    %30 = arith.mulf %29, %26 : vector<8x32xf32>
    %31 = arith.addf %28, %30 : vector<8x32xf32>
    %32 = vector.extract_strided_slice %24 {offsets = [0, 64], sizes = [8, 32], strides = [1, 1]} : vector<8x96xf32> to vector<8x32xf32>
    %33 = math.tanh %31 : vector<8x32xf32>
    %34 = arith.mulf %32, %33 : vector<8x32xf32>
    %c0_24 = arith.constant 0 : index
    %c0_25 = arith.constant 0 : index
    %c0_26 = arith.constant 0 : index
    %35 = vector.load %arg9[%c0_24, %c0_25, %c0_26] : memref<8x8x32xf32, #tpu.memory_space<vmem>>, vector<1x8x32xf32>
    %36 = vector.shape_cast %35 : vector<1x8x32xf32> to vector<8x32xf32>
    %37 = vector.extract_strided_slice %34 {offsets = [0, 0], sizes = [8, 16], strides = [1, 1]} : vector<8x32xf32> to vector<8x16xf32>
    %cst_27 = arith.constant dense<0.000000e+00> : vector<8x32xf32>
    %38 = tpu.matmul %37, %6, %cst_27 {dimension_numbers = #tpu.dot_dimension_numbers<[1], [0], [0], [1], [0, 0, 1, 1], [], []>} : vector<8x16xf32>, vector<16x32xf32>, vector<8x32xf32> -> vector<8x32xf32>
    %39 = arith.addf %36, %38 : vector<8x32xf32>
    %c0_28 = arith.constant 0 : index
    %c0_29 = arith.constant 0 : index
    %c0_30 = arith.constant 0 : index
    %40 = vector.load %arg9[%c0_28, %c0_29, %c0_30] : memref<8x8x32xf32, #tpu.memory_space<vmem>>, vector<1x8x32xf32>
    %41 = vector.shape_cast %40 : vector<1x8x32xf32> to vector<8x32xf32>
    %42 = vector.shape_cast %39 : vector<8x32xf32> to vector<1x8x32xf32>
    tpu.vector_store %arg9[%c0_28, %c0_29, %c0_30], %42 {strides = array<i32>} : memref<8x8x32xf32, #tpu.memory_space<vmem>>, vector<1x8x32xf32>,
    %c7 = arith.constant 7 : index
    %c0_31 = arith.constant 0 : index
    %c0_32 = arith.constant 0 : index
    %43 = vector.load %arg9[%c7, %c0_31, %c0_32] : memref<8x8x32xf32, #tpu.memory_space<vmem>>, vector<1x8x32xf32>
    %44 = vector.shape_cast %43 : vector<1x8x32xf32> to vector<8x32xf32>
    %45 = vector.extract_strided_slice %34 {offsets = [0, 16], sizes = [8, 16], strides = [1, 1]} : vector<8x32xf32> to vector<8x16xf32>
    %cst_33 = arith.constant dense<0.000000e+00> : vector<8x32xf32>
    %46 = tpu.matmul %45, %7, %cst_33 {dimension_numbers = #tpu.dot_dimension_numbers<[1], [0], [0], [1], [0, 0, 1, 1], [], []>} : vector<8x16xf32>, vector<16x32xf32>, vector<8x32xf32> -> vector<8x32xf32>
    %47 = arith.addf %44, %46 : vector<8x32xf32>
    %c7_34 = arith.constant 7 : index
    %c0_35 = arith.constant 0 : index
    %c0_36 = arith.constant 0 : index
    %48 = vector.load %arg9[%c7_34, %c0_35, %c0_36] : memref<8x8x32xf32, #tpu.memory_space<vmem>>, vector<1x8x32xf32>
    %49 = vector.shape_cast %48 : vector<1x8x32xf32> to vector<8x32xf32>
    %50 = vector.shape_cast %47 : vector<8x32xf32> to vector<1x8x32xf32>
    tpu.vector_store %arg9[%c7_34, %c0_35, %c0_36], %50 {strides = array<i32>} : memref<8x8x32xf32, #tpu.memory_space<vmem>>, vector<1x8x32xf32>,
    %cst_37 = arith.constant dense<0.000000e+00> : vector<8x128xf32>
    %51 = tpu.matmul %34, %12, %cst_37 {dimension_numbers = #tpu.dot_dimension_numbers<[1], [0], [0], [1], [0, 0, 1, 1], [], []>} : vector<8x32xf32>, vector<32x128xf32>, vector<8x128xf32> -> vector<8x128xf32>
    %52 = arith.addf %5, %51 : vector<8x128xf32>
    %53 = vector.extract_strided_slice %52 {offsets = [0, 0], sizes = [8, 96], strides = [1, 1]} : vector<8x128xf32> to vector<8x96xf32>
    %54 = arith.negf %53 : vector<8x96xf32>
    %55 = math.exp %54 : vector<8x96xf32>
    %cst_38 = arith.constant 1.000000e+00 : f32
    %56 = vector.broadcast %cst_38 : f32 to vector<8x96xf32>
    %57 = arith.addf %56, %55 : vector<8x96xf32>
    %58 = arith.divf %56, %57 : vector<8x96xf32>
    %59 = vector.extract_strided_slice %52 {offsets = [0, 96], sizes = [8, 32], strides = [1, 1]} : vector<8x128xf32> to vector<8x32xf32>
    %60 = math.tanh %59 : vector<8x32xf32>
    %61 = vector.extract_strided_slice %58 {offsets = [0, 32], sizes = [8, 32], strides = [1, 1]} : vector<8x96xf32> to vector<8x32xf32>
    %62 = arith.mulf %61, %31 : vector<8x32xf32>
    %63 = vector.extract_strided_slice %58 {offsets = [0, 0], sizes = [8, 32], strides = [1, 1]} : vector<8x96xf32> to vector<8x32xf32>
    %64 = arith.mulf %63, %60 : vector<8x32xf32>
    %65 = arith.addf %62, %64 : vector<8x32xf32>
    %66 = vector.extract_strided_slice %58 {offsets = [0, 64], sizes = [8, 32], strides = [1, 1]} : vector<8x96xf32> to vector<8x32xf32>
    %67 = math.tanh %65 : vector<8x32xf32>
    %68 = arith.mulf %66, %67 : vector<8x32xf32>
    %c1 = arith.constant 1 : index
    %c0_39 = arith.constant 0 : index
    %c0_40 = arith.constant 0 : index
    %69 = vector.load %arg9[%c1, %c0_39, %c0_40] : memref<8x8x32xf32, #tpu.memory_space<vmem>>, vector<1x8x32xf32>
    %70 = vector.shape_cast %69 : vector<1x8x32xf32> to vector<8x32xf32>
    %71 = vector.extract_strided_slice %68 {offsets = [0, 0], sizes = [8, 16], strides = [1, 1]} : vector<8x32xf32> to vector<8x16xf32>
    %cst_41 = arith.constant dense<0.000000e+00> : vector<8x32xf32>
    %72 = tpu.matmul %71, %6, %cst_41 {dimension_numbers = #tpu.dot_dimension_numbers<[1], [0], [0], [1], [0, 0, 1, 1], [], []>} : vector<8x16xf32>, vector<16x32xf32>, vector<8x32xf32> -> vector<8x32xf32>
    %73 = arith.addf %70, %72 : vector<8x32xf32>
    %c1_42 = arith.constant 1 : index
    %c0_43 = arith.constant 0 : index
    %c0_44 = arith.constant 0 : index
    %74 = vector.load %arg9[%c1_42, %c0_43, %c0_44] : memref<8x8x32xf32, #tpu.memory_space<vmem>>, vector<1x8x32xf32>
    %75 = vector.shape_cast %74 : vector<1x8x32xf32> to vector<8x32xf32>
    %76 = vector.shape_cast %73 : vector<8x32xf32> to vector<1x8x32xf32>
    tpu.vector_store %arg9[%c1_42, %c0_43, %c0_44], %76 {strides = array<i32>} : memref<8x8x32xf32, #tpu.memory_space<vmem>>, vector<1x8x32xf32>,
    %c6 = arith.constant 6 : index
    %c0_45 = arith.constant 0 : index
    %c0_46 = arith.constant 0 : index
    %77 = vector.load %arg9[%c6, %c0_45, %c0_46] : memref<8x8x32xf32, #tpu.memory_space<vmem>>, vector<1x8x32xf32>
    %78 = vector.shape_cast %77 : vector<1x8x32xf32> to vector<8x32xf32>
    %79 = vector.extract_strided_slice %68 {offsets = [0, 16], sizes = [8, 16], strides = [1, 1]} : vector<8x32xf32> to vector<8x16xf32>
    %cst_47 = arith.constant dense<0.000000e+00> : vector<8x32xf32>
    %80 = tpu.matmul %79, %7, %cst_47 {dimension_numbers = #tpu.dot_dimension_numbers<[1], [0], [0], [1], [0, 0, 1, 1], [], []>} : vector<8x16xf32>, vector<16x32xf32>, vector<8x32xf32> -> vector<8x32xf32>
    %81 = arith.addf %78, %80 : vector<8x32xf32>
    %c6_48 = arith.constant 6 : index
    %c0_49 = arith.constant 0 : index
    %c0_50 = arith.constant 0 : index
    %82 = vector.load %arg9[%c6_48, %c0_49, %c0_50] : memref<8x8x32xf32, #tpu.memory_space<vmem>>, vector<1x8x32xf32>
    %83 = vector.shape_cast %82 : vector<1x8x32xf32> to vector<8x32xf32>
    %84 = vector.shape_cast %81 : vector<8x32xf32> to vector<1x8x32xf32>
    tpu.vector_store %arg9[%c6_48, %c0_49, %c0_50], %84 {strides = array<i32>} : memref<8x8x32xf32, #tpu.memory_space<vmem>>, vector<1x8x32xf32>,
    %cst_51 = arith.constant dense<0.000000e+00> : vector<8x128xf32>
    %85 = tpu.matmul %68, %12, %cst_51 {dimension_numbers = #tpu.dot_dimension_numbers<[1], [0], [0], [1], [0, 0, 1, 1], [], []>} : vector<8x32xf32>, vector<32x128xf32>, vector<8x128xf32> -> vector<8x128xf32>
    %86 = arith.addf %5, %85 : vector<8x128xf32>
    %87 = vector.extract_strided_slice %86 {offsets = [0, 0], sizes = [8, 96], strides = [1, 1]} : vector<8x128xf32> to vector<8x96xf32>
    %88 = arith.negf %87 : vector<8x96xf32>
    %89 = math.exp %88 : vector<8x96xf32>
    %cst_52 = arith.constant 1.000000e+00 : f32
    %90 = vector.broadcast %cst_52 : f32 to vector<8x96xf32>
    %91 = arith.addf %90, %89 : vector<8x96xf32>
    %92 = arith.divf %90, %91 : vector<8x96xf32>
    %93 = vector.extract_strided_slice %86 {offsets = [0, 96], sizes = [8, 32], strides = [1, 1]} : vector<8x128xf32> to vector<8x32xf32>
    %94 = math.tanh %93 : vector<8x32xf32>
    %95 = vector.extract_strided_slice %92 {offsets = [0, 32], sizes = [8, 32], strides = [1, 1]} : vector<8x96xf32> to vector<8x32xf32>
    %96 = arith.mulf %95, %65 : vector<8x32xf32>
    %97 = vector.extract_strided_slice %92 {offsets = [0, 0], sizes = [8, 32], strides = [1, 1]} : vector<8x96xf32> to vector<8x32xf32>
    %98 = arith.mulf %97, %94 : vector<8x32xf32>
    %99 = arith.addf %96, %98 : vector<8x32xf32>
    %100 = vector.extract_strided_slice %92 {offsets = [0, 64], sizes = [8, 32], strides = [1, 1]} : vector<8x96xf32> to vector<8x32xf32>
    %101 = math.tanh %99 : vector<8x32xf32>
    %102 = arith.mulf %100, %101 : vector<8x32xf32>
    %c2 = arith.constant 2 : index
    %c0_53 = arith.constant 0 : index
    %c0_54 = arith.constant 0 : index
    %103 = vector.load %arg9[%c2, %c0_53, %c0_54] : memref<8x8x32xf32, #tpu.memory_space<vmem>>, vector<1x8x32xf32>
    %104 = vector.shape_cast %103 : vector<1x8x32xf32> to vector<8x32xf32>
    %105 = vector.extract_strided_slice %102 {offsets = [0, 0], sizes = [8, 16], strides = [1, 1]} : vector<8x32xf32> to vector<8x16xf32>
    %cst_55 = arith.constant dense<0.000000e+00> : vector<8x32xf32>
    %106 = tpu.matmul %105, %6, %cst_55 {dimension_numbers = #tpu.dot_dimension_numbers<[1], [0], [0], [1], [0, 0, 1, 1], [], []>} : vector<8x16xf32>, vector<16x32xf32>, vector<8x32xf32> -> vector<8x32xf32>
    %107 = arith.addf %104, %106 : vector<8x32xf32>
    %c2_56 = arith.constant 2 : index
    %c0_57 = arith.constant 0 : index
    %c0_58 = arith.constant 0 : index
    %108 = vector.load %arg9[%c2_56, %c0_57, %c0_58] : memref<8x8x32xf32, #tpu.memory_space<vmem>>, vector<1x8x32xf32>
    %109 = vector.shape_cast %108 : vector<1x8x32xf32> to vector<8x32xf32>
    %110 = vector.shape_cast %107 : vector<8x32xf32> to vector<1x8x32xf32>
    tpu.vector_store %arg9[%c2_56, %c0_57, %c0_58], %110 {strides = array<i32>} : memref<8x8x32xf32, #tpu.memory_space<vmem>>, vector<1x8x32xf32>,
    %c5 = arith.constant 5 : index
    %c0_59 = arith.constant 0 : index
    %c0_60 = arith.constant 0 : index
    %111 = vector.load %arg9[%c5, %c0_59, %c0_60] : memref<8x8x32xf32, #tpu.memory_space<vmem>>, vector<1x8x32xf32>
    %112 = vector.shape_cast %111 : vector<1x8x32xf32> to vector<8x32xf32>
    %113 = vector.extract_strided_slice %102 {offsets = [0, 16], sizes = [8, 16], strides = [1, 1]} : vector<8x32xf32> to vector<8x16xf32>
    %cst_61 = arith.constant dense<0.000000e+00> : vector<8x32xf32>
    %114 = tpu.matmul %113, %7, %cst_61 {dimension_numbers = #tpu.dot_dimension_numbers<[1], [0], [0], [1], [0, 0, 1, 1], [], []>} : vector<8x16xf32>, vector<16x32xf32>, vector<8x32xf32> -> vector<8x32xf32>
    %115 = arith.addf %112, %114 : vector<8x32xf32>
    %c5_62 = arith.constant 5 : index
    %c0_63 = arith.constant 0 : index
    %c0_64 = arith.constant 0 : index
    %116 = vector.load %arg9[%c5_62, %c0_63, %c0_64] : memref<8x8x32xf32, #tpu.memory_space<vmem>>, vector<1x8x32xf32>
    %117 = vector.shape_cast %116 : vector<1x8x32xf32> to vector<8x32xf32>
    %118 = vector.shape_cast %115 : vector<8x32xf32> to vector<1x8x32xf32>
    tpu.vector_store %arg9[%c5_62, %c0_63, %c0_64], %118 {strides = array<i32>} : memref<8x8x32xf32, #tpu.memory_space<vmem>>, vector<1x8x32xf32>,
    %cst_65 = arith.constant dense<0.000000e+00> : vector<8x128xf32>
    %119 = tpu.matmul %102, %12, %cst_65 {dimension_numbers = #tpu.dot_dimension_numbers<[1], [0], [0], [1], [0, 0, 1, 1], [], []>} : vector<8x32xf32>, vector<32x128xf32>, vector<8x128xf32> -> vector<8x128xf32>
    %120 = arith.addf %5, %119 : vector<8x128xf32>
    %121 = vector.extract_strided_slice %120 {offsets = [0, 0], sizes = [8, 96], strides = [1, 1]} : vector<8x128xf32> to vector<8x96xf32>
    %122 = arith.negf %121 : vector<8x96xf32>
    %123 = math.exp %122 : vector<8x96xf32>
    %cst_66 = arith.constant 1.000000e+00 : f32
    %124 = vector.broadcast %cst_66 : f32 to vector<8x96xf32>
    %125 = arith.addf %124, %123 : vector<8x96xf32>
    %126 = arith.divf %124, %125 : vector<8x96xf32>
    %127 = vector.extract_strided_slice %120 {offsets = [0, 96], sizes = [8, 32], strides = [1, 1]} : vector<8x128xf32> to vector<8x32xf32>
    %128 = math.tanh %127 : vector<8x32xf32>
    %129 = vector.extract_strided_slice %126 {offsets = [0, 32], sizes = [8, 32], strides = [1, 1]} : vector<8x96xf32> to vector<8x32xf32>
    %130 = arith.mulf %129, %99 : vector<8x32xf32>
    %131 = vector.extract_strided_slice %126 {offsets = [0, 0], sizes = [8, 32], strides = [1, 1]} : vector<8x96xf32> to vector<8x32xf32>
    %132 = arith.mulf %131, %128 : vector<8x32xf32>
    %133 = arith.addf %130, %132 : vector<8x32xf32>
    %134 = vector.extract_strided_slice %126 {offsets = [0, 64], sizes = [8, 32], strides = [1, 1]} : vector<8x96xf32> to vector<8x32xf32>
    %135 = math.tanh %133 : vector<8x32xf32>
    %136 = arith.mulf %134, %135 : vector<8x32xf32>
    %c3 = arith.constant 3 : index
    %c0_67 = arith.constant 0 : index
    %c0_68 = arith.constant 0 : index
    %137 = vector.load %arg9[%c3, %c0_67, %c0_68] : memref<8x8x32xf32, #tpu.memory_space<vmem>>, vector<1x8x32xf32>
    %138 = vector.shape_cast %137 : vector<1x8x32xf32> to vector<8x32xf32>
    %139 = vector.extract_strided_slice %136 {offsets = [0, 0], sizes = [8, 16], strides = [1, 1]} : vector<8x32xf32> to vector<8x16xf32>
    %cst_69 = arith.constant dense<0.000000e+00> : vector<8x32xf32>
    %140 = tpu.matmul %139, %6, %cst_69 {dimension_numbers = #tpu.dot_dimension_numbers<[1], [0], [0], [1], [0, 0, 1, 1], [], []>} : vector<8x16xf32>, vector<16x32xf32>, vector<8x32xf32> -> vector<8x32xf32>
    %141 = arith.addf %138, %140 : vector<8x32xf32>
    %c3_70 = arith.constant 3 : index
    %c0_71 = arith.constant 0 : index
    %c0_72 = arith.constant 0 : index
    %142 = vector.load %arg9[%c3_70, %c0_71, %c0_72] : memref<8x8x32xf32, #tpu.memory_space<vmem>>, vector<1x8x32xf32>
    %143 = vector.shape_cast %142 : vector<1x8x32xf32> to vector<8x32xf32>
    %144 = vector.shape_cast %141 : vector<8x32xf32> to vector<1x8x32xf32>
    tpu.vector_store %arg9[%c3_70, %c0_71, %c0_72], %144 {strides = array<i32>} : memref<8x8x32xf32, #tpu.memory_space<vmem>>, vector<1x8x32xf32>,
    %c4 = arith.constant 4 : index
    %c0_73 = arith.constant 0 : index
    %c0_74 = arith.constant 0 : index
    %145 = vector.load %arg9[%c4, %c0_73, %c0_74] : memref<8x8x32xf32, #tpu.memory_space<vmem>>, vector<1x8x32xf32>
    %146 = vector.shape_cast %145 : vector<1x8x32xf32> to vector<8x32xf32>
    %147 = vector.extract_strided_slice %136 {offsets = [0, 16], sizes = [8, 16], strides = [1, 1]} : vector<8x32xf32> to vector<8x16xf32>
    %cst_75 = arith.constant dense<0.000000e+00> : vector<8x32xf32>
    %148 = tpu.matmul %147, %7, %cst_75 {dimension_numbers = #tpu.dot_dimension_numbers<[1], [0], [0], [1], [0, 0, 1, 1], [], []>} : vector<8x16xf32>, vector<16x32xf32>, vector<8x32xf32> -> vector<8x32xf32>
    %149 = arith.addf %146, %148 : vector<8x32xf32>
    %c4_76 = arith.constant 4 : index
    %c0_77 = arith.constant 0 : index
    %c0_78 = arith.constant 0 : index
    %150 = vector.load %arg9[%c4_76, %c0_77, %c0_78] : memref<8x8x32xf32, #tpu.memory_space<vmem>>, vector<1x8x32xf32>
    %151 = vector.shape_cast %150 : vector<1x8x32xf32> to vector<8x32xf32>
    %152 = vector.shape_cast %149 : vector<8x32xf32> to vector<1x8x32xf32>
    tpu.vector_store %arg9[%c4_76, %c0_77, %c0_78], %152 {strides = array<i32>} : memref<8x8x32xf32, #tpu.memory_space<vmem>>, vector<1x8x32xf32>,
    %cst_79 = arith.constant dense<0.000000e+00> : vector<8x128xf32>
    %153 = tpu.matmul %136, %12, %cst_79 {dimension_numbers = #tpu.dot_dimension_numbers<[1], [0], [0], [1], [0, 0, 1, 1], [], []>} : vector<8x32xf32>, vector<32x128xf32>, vector<8x128xf32> -> vector<8x128xf32>
    %154 = arith.addf %5, %153 : vector<8x128xf32>
    %155 = vector.extract_strided_slice %154 {offsets = [0, 0], sizes = [8, 96], strides = [1, 1]} : vector<8x128xf32> to vector<8x96xf32>
    %156 = arith.negf %155 : vector<8x96xf32>
    %157 = math.exp %156 : vector<8x96xf32>
    %cst_80 = arith.constant 1.000000e+00 : f32
    %158 = vector.broadcast %cst_80 : f32 to vector<8x96xf32>
    %159 = arith.addf %158, %157 : vector<8x96xf32>
    %160 = arith.divf %158, %159 : vector<8x96xf32>
    %161 = vector.extract_strided_slice %154 {offsets = [0, 96], sizes = [8, 32], strides = [1, 1]} : vector<8x128xf32> to vector<8x32xf32>
    %162 = math.tanh %161 : vector<8x32xf32>
    %163 = vector.extract_strided_slice %160 {offsets = [0, 32], sizes = [8, 32], strides = [1, 1]} : vector<8x96xf32> to vector<8x32xf32>
    %164 = arith.mulf %163, %133 : vector<8x32xf32>
    %165 = vector.extract_strided_slice %160 {offsets = [0, 0], sizes = [8, 32], strides = [1, 1]} : vector<8x96xf32> to vector<8x32xf32>
    %166 = arith.mulf %165, %162 : vector<8x32xf32>
    %167 = arith.addf %164, %166 : vector<8x32xf32>
    %168 = vector.extract_strided_slice %160 {offsets = [0, 64], sizes = [8, 32], strides = [1, 1]} : vector<8x96xf32> to vector<8x32xf32>
    %169 = math.tanh %167 : vector<8x32xf32>
    %170 = arith.mulf %168, %169 : vector<8x32xf32>
    %c4_81 = arith.constant 4 : index
    %c0_82 = arith.constant 0 : index
    %c0_83 = arith.constant 0 : index
    %171 = vector.load %arg9[%c4_81, %c0_82, %c0_83] : memref<8x8x32xf32, #tpu.memory_space<vmem>>, vector<1x8x32xf32>
    %172 = vector.shape_cast %171 : vector<1x8x32xf32> to vector<8x32xf32>
    %173 = vector.extract_strided_slice %170 {offsets = [0, 0], sizes = [8, 16], strides = [1, 1]} : vector<8x32xf32> to vector<8x16xf32>
    %cst_84 = arith.constant dense<0.000000e+00> : vector<8x32xf32>
    %174 = tpu.matmul %173, %6, %cst_84 {dimension_numbers = #tpu.dot_dimension_numbers<[1], [0], [0], [1], [0, 0, 1, 1], [], []>} : vector<8x16xf32>, vector<16x32xf32>, vector<8x32xf32> -> vector<8x32xf32>
    %175 = arith.addf %172, %174 : vector<8x32xf32>
    %c4_85 = arith.constant 4 : index
    %c0_86 = arith.constant 0 : index
    %c0_87 = arith.constant 0 : index
    %176 = vector.load %arg9[%c4_85, %c0_86, %c0_87] : memref<8x8x32xf32, #tpu.memory_space<vmem>>, vector<1x8x32xf32>
    %177 = vector.shape_cast %176 : vector<1x8x32xf32> to vector<8x32xf32>
    %178 = vector.shape_cast %175 : vector<8x32xf32> to vector<1x8x32xf32>
    tpu.vector_store %arg9[%c4_85, %c0_86, %c0_87], %178 {strides = array<i32>} : memref<8x8x32xf32, #tpu.memory_space<vmem>>, vector<1x8x32xf32>,
    %c3_88 = arith.constant 3 : index
    %c0_89 = arith.constant 0 : index
    %c0_90 = arith.constant 0 : index
    %179 = vector.load %arg9[%c3_88, %c0_89, %c0_90] : memref<8x8x32xf32, #tpu.memory_space<vmem>>, vector<1x8x32xf32>
    %180 = vector.shape_cast %179 : vector<1x8x32xf32> to vector<8x32xf32>
    %181 = vector.extract_strided_slice %170 {offsets = [0, 16], sizes = [8, 16], strides = [1, 1]} : vector<8x32xf32> to vector<8x16xf32>
    %cst_91 = arith.constant dense<0.000000e+00> : vector<8x32xf32>
    %182 = tpu.matmul %181, %7, %cst_91 {dimension_numbers = #tpu.dot_dimension_numbers<[1], [0], [0], [1], [0, 0, 1, 1], [], []>} : vector<8x16xf32>, vector<16x32xf32>, vector<8x32xf32> -> vector<8x32xf32>
    %183 = arith.addf %180, %182 : vector<8x32xf32>
    %c3_92 = arith.constant 3 : index
    %c0_93 = arith.constant 0 : index
    %c0_94 = arith.constant 0 : index
    %184 = vector.load %arg9[%c3_92, %c0_93, %c0_94] : memref<8x8x32xf32, #tpu.memory_space<vmem>>, vector<1x8x32xf32>
    %185 = vector.shape_cast %184 : vector<1x8x32xf32> to vector<8x32xf32>
    %186 = vector.shape_cast %183 : vector<8x32xf32> to vector<1x8x32xf32>
    tpu.vector_store %arg9[%c3_92, %c0_93, %c0_94], %186 {strides = array<i32>} : memref<8x8x32xf32, #tpu.memory_space<vmem>>, vector<1x8x32xf32>,
    %cst_95 = arith.constant dense<0.000000e+00> : vector<8x128xf32>
    %187 = tpu.matmul %170, %12, %cst_95 {dimension_numbers = #tpu.dot_dimension_numbers<[1], [0], [0], [1], [0, 0, 1, 1], [], []>} : vector<8x32xf32>, vector<32x128xf32>, vector<8x128xf32> -> vector<8x128xf32>
    %188 = arith.addf %5, %187 : vector<8x128xf32>
    %189 = vector.extract_strided_slice %188 {offsets = [0, 0], sizes = [8, 96], strides = [1, 1]} : vector<8x128xf32> to vector<8x96xf32>
    %190 = arith.negf %189 : vector<8x96xf32>
    %191 = math.exp %190 : vector<8x96xf32>
    %cst_96 = arith.constant 1.000000e+00 : f32
    %192 = vector.broadcast %cst_96 : f32 to vector<8x96xf32>
    %193 = arith.addf %192, %191 : vector<8x96xf32>
    %194 = arith.divf %192, %193 : vector<8x96xf32>
    %195 = vector.extract_strided_slice %188 {offsets = [0, 96], sizes = [8, 32], strides = [1, 1]} : vector<8x128xf32> to vector<8x32xf32>
    %196 = math.tanh %195 : vector<8x32xf32>
    %197 = vector.extract_strided_slice %194 {offsets = [0, 32], sizes = [8, 32], strides = [1, 1]} : vector<8x96xf32> to vector<8x32xf32>
    %198 = arith.mulf %197, %167 : vector<8x32xf32>
    %199 = vector.extract_strided_slice %194 {offsets = [0, 0], sizes = [8, 32], strides = [1, 1]} : vector<8x96xf32> to vector<8x32xf32>
    %200 = arith.mulf %199, %196 : vector<8x32xf32>
    %201 = arith.addf %198, %200 : vector<8x32xf32>
    %202 = vector.extract_strided_slice %194 {offsets = [0, 64], sizes = [8, 32], strides = [1, 1]} : vector<8x96xf32> to vector<8x32xf32>
    %203 = math.tanh %201 : vector<8x32xf32>
    %204 = arith.mulf %202, %203 : vector<8x32xf32>
    %c5_97 = arith.constant 5 : index
    %c0_98 = arith.constant 0 : index
    %c0_99 = arith.constant 0 : index
    %205 = vector.load %arg9[%c5_97, %c0_98, %c0_99] : memref<8x8x32xf32, #tpu.memory_space<vmem>>, vector<1x8x32xf32>
    %206 = vector.shape_cast %205 : vector<1x8x32xf32> to vector<8x32xf32>
    %207 = vector.extract_strided_slice %204 {offsets = [0, 0], sizes = [8, 16], strides = [1, 1]} : vector<8x32xf32> to vector<8x16xf32>
    %cst_100 = arith.constant dense<0.000000e+00> : vector<8x32xf32>
    %208 = tpu.matmul %207, %6, %cst_100 {dimension_numbers = #tpu.dot_dimension_numbers<[1], [0], [0], [1], [0, 0, 1, 1], [], []>} : vector<8x16xf32>, vector<16x32xf32>, vector<8x32xf32> -> vector<8x32xf32>
    %209 = arith.addf %206, %208 : vector<8x32xf32>
    %c5_101 = arith.constant 5 : index
    %c0_102 = arith.constant 0 : index
    %c0_103 = arith.constant 0 : index
    %210 = vector.load %arg9[%c5_101, %c0_102, %c0_103] : memref<8x8x32xf32, #tpu.memory_space<vmem>>, vector<1x8x32xf32>
    %211 = vector.shape_cast %210 : vector<1x8x32xf32> to vector<8x32xf32>
    %212 = vector.shape_cast %209 : vector<8x32xf32> to vector<1x8x32xf32>
    tpu.vector_store %arg9[%c5_101, %c0_102, %c0_103], %212 {strides = array<i32>} : memref<8x8x32xf32, #tpu.memory_space<vmem>>, vector<1x8x32xf32>,
    %c2_104 = arith.constant 2 : index
    %c0_105 = arith.constant 0 : index
    %c0_106 = arith.constant 0 : index
    %213 = vector.load %arg9[%c2_104, %c0_105, %c0_106] : memref<8x8x32xf32, #tpu.memory_space<vmem>>, vector<1x8x32xf32>
    %214 = vector.shape_cast %213 : vector<1x8x32xf32> to vector<8x32xf32>
    %215 = vector.extract_strided_slice %204 {offsets = [0, 16], sizes = [8, 16], strides = [1, 1]} : vector<8x32xf32> to vector<8x16xf32>
    %cst_107 = arith.constant dense<0.000000e+00> : vector<8x32xf32>
    %216 = tpu.matmul %215, %7, %cst_107 {dimension_numbers = #tpu.dot_dimension_numbers<[1], [0], [0], [1], [0, 0, 1, 1], [], []>} : vector<8x16xf32>, vector<16x32xf32>, vector<8x32xf32> -> vector<8x32xf32>
    %217 = arith.addf %214, %216 : vector<8x32xf32>
    %c2_108 = arith.constant 2 : index
    %c0_109 = arith.constant 0 : index
    %c0_110 = arith.constant 0 : index
    %218 = vector.load %arg9[%c2_108, %c0_109, %c0_110] : memref<8x8x32xf32, #tpu.memory_space<vmem>>, vector<1x8x32xf32>
    %219 = vector.shape_cast %218 : vector<1x8x32xf32> to vector<8x32xf32>
    %220 = vector.shape_cast %217 : vector<8x32xf32> to vector<1x8x32xf32>
    tpu.vector_store %arg9[%c2_108, %c0_109, %c0_110], %220 {strides = array<i32>} : memref<8x8x32xf32, #tpu.memory_space<vmem>>, vector<1x8x32xf32>,
    %cst_111 = arith.constant dense<0.000000e+00> : vector<8x128xf32>
    %221 = tpu.matmul %204, %12, %cst_111 {dimension_numbers = #tpu.dot_dimension_numbers<[1], [0], [0], [1], [0, 0, 1, 1], [], []>} : vector<8x32xf32>, vector<32x128xf32>, vector<8x128xf32> -> vector<8x128xf32>
    %222 = arith.addf %5, %221 : vector<8x128xf32>
    %223 = vector.extract_strided_slice %222 {offsets = [0, 0], sizes = [8, 96], strides = [1, 1]} : vector<8x128xf32> to vector<8x96xf32>
    %224 = arith.negf %223 : vector<8x96xf32>
    %225 = math.exp %224 : vector<8x96xf32>
    %cst_112 = arith.constant 1.000000e+00 : f32
    %226 = vector.broadcast %cst_112 : f32 to vector<8x96xf32>
    %227 = arith.addf %226, %225 : vector<8x96xf32>
    %228 = arith.divf %226, %227 : vector<8x96xf32>
    %229 = vector.extract_strided_slice %222 {offsets = [0, 96], sizes = [8, 32], strides = [1, 1]} : vector<8x128xf32> to vector<8x32xf32>
    %230 = math.tanh %229 : vector<8x32xf32>
    %231 = vector.extract_strided_slice %228 {offsets = [0, 32], sizes = [8, 32], strides = [1, 1]} : vector<8x96xf32> to vector<8x32xf32>
    %232 = arith.mulf %231, %201 : vector<8x32xf32>
    %233 = vector.extract_strided_slice %228 {offsets = [0, 0], sizes = [8, 32], strides = [1, 1]} : vector<8x96xf32> to vector<8x32xf32>
    %234 = arith.mulf %233, %230 : vector<8x32xf32>
    %235 = arith.addf %232, %234 : vector<8x32xf32>
    %236 = vector.extract_strided_slice %228 {offsets = [0, 64], sizes = [8, 32], strides = [1, 1]} : vector<8x96xf32> to vector<8x32xf32>
    %237 = math.tanh %235 : vector<8x32xf32>
    %238 = arith.mulf %236, %237 : vector<8x32xf32>
    %c6_113 = arith.constant 6 : index
    %c0_114 = arith.constant 0 : index
    %c0_115 = arith.constant 0 : index
    %239 = vector.load %arg9[%c6_113, %c0_114, %c0_115] : memref<8x8x32xf32, #tpu.memory_space<vmem>>, vector<1x8x32xf32>
    %240 = vector.shape_cast %239 : vector<1x8x32xf32> to vector<8x32xf32>
    %241 = vector.extract_strided_slice %238 {offsets = [0, 0], sizes = [8, 16], strides = [1, 1]} : vector<8x32xf32> to vector<8x16xf32>
    %cst_116 = arith.constant dense<0.000000e+00> : vector<8x32xf32>
    %242 = tpu.matmul %241, %6, %cst_116 {dimension_numbers = #tpu.dot_dimension_numbers<[1], [0], [0], [1], [0, 0, 1, 1], [], []>} : vector<8x16xf32>, vector<16x32xf32>, vector<8x32xf32> -> vector<8x32xf32>
    %243 = arith.addf %240, %242 : vector<8x32xf32>
    %c6_117 = arith.constant 6 : index
    %c0_118 = arith.constant 0 : index
    %c0_119 = arith.constant 0 : index
    %244 = vector.load %arg9[%c6_117, %c0_118, %c0_119] : memref<8x8x32xf32, #tpu.memory_space<vmem>>, vector<1x8x32xf32>
    %245 = vector.shape_cast %244 : vector<1x8x32xf32> to vector<8x32xf32>
    %246 = vector.shape_cast %243 : vector<8x32xf32> to vector<1x8x32xf32>
    tpu.vector_store %arg9[%c6_117, %c0_118, %c0_119], %246 {strides = array<i32>} : memref<8x8x32xf32, #tpu.memory_space<vmem>>, vector<1x8x32xf32>,
    %c1_120 = arith.constant 1 : index
    %c0_121 = arith.constant 0 : index
    %c0_122 = arith.constant 0 : index
    %247 = vector.load %arg9[%c1_120, %c0_121, %c0_122] : memref<8x8x32xf32, #tpu.memory_space<vmem>>, vector<1x8x32xf32>
    %248 = vector.shape_cast %247 : vector<1x8x32xf32> to vector<8x32xf32>
    %249 = vector.extract_strided_slice %238 {offsets = [0, 16], sizes = [8, 16], strides = [1, 1]} : vector<8x32xf32> to vector<8x16xf32>
    %cst_123 = arith.constant dense<0.000000e+00> : vector<8x32xf32>
    %250 = tpu.matmul %249, %7, %cst_123 {dimension_numbers = #tpu.dot_dimension_numbers<[1], [0], [0], [1], [0, 0, 1, 1], [], []>} : vector<8x16xf32>, vector<16x32xf32>, vector<8x32xf32> -> vector<8x32xf32>
    %251 = arith.addf %248, %250 : vector<8x32xf32>
    %c1_124 = arith.constant 1 : index
    %c0_125 = arith.constant 0 : index
    %c0_126 = arith.constant 0 : index
    %252 = vector.load %arg9[%c1_124, %c0_125, %c0_126] : memref<8x8x32xf32, #tpu.memory_space<vmem>>, vector<1x8x32xf32>
    %253 = vector.shape_cast %252 : vector<1x8x32xf32> to vector<8x32xf32>
    %254 = vector.shape_cast %251 : vector<8x32xf32> to vector<1x8x32xf32>
    tpu.vector_store %arg9[%c1_124, %c0_125, %c0_126], %254 {strides = array<i32>} : memref<8x8x32xf32, #tpu.memory_space<vmem>>, vector<1x8x32xf32>,
    %cst_127 = arith.constant dense<0.000000e+00> : vector<8x128xf32>
    %255 = tpu.matmul %238, %12, %cst_127 {dimension_numbers = #tpu.dot_dimension_numbers<[1], [0], [0], [1], [0, 0, 1, 1], [], []>} : vector<8x32xf32>, vector<32x128xf32>, vector<8x128xf32> -> vector<8x128xf32>
    %256 = arith.addf %5, %255 : vector<8x128xf32>
    %257 = vector.extract_strided_slice %256 {offsets = [0, 0], sizes = [8, 96], strides = [1, 1]} : vector<8x128xf32> to vector<8x96xf32>
    %258 = arith.negf %257 : vector<8x96xf32>
    %259 = math.exp %258 : vector<8x96xf32>
    %cst_128 = arith.constant 1.000000e+00 : f32
    %260 = vector.broadcast %cst_128 : f32 to vector<8x96xf32>
    %261 = arith.addf %260, %259 : vector<8x96xf32>
    %262 = arith.divf %260, %261 : vector<8x96xf32>
    %263 = vector.extract_strided_slice %256 {offsets = [0, 96], sizes = [8, 32], strides = [1, 1]} : vector<8x128xf32> to vector<8x32xf32>
    %264 = math.tanh %263 : vector<8x32xf32>
    %265 = vector.extract_strided_slice %262 {offsets = [0, 32], sizes = [8, 32], strides = [1, 1]} : vector<8x96xf32> to vector<8x32xf32>
    %266 = arith.mulf %265, %235 : vector<8x32xf32>
    %267 = vector.extract_strided_slice %262 {offsets = [0, 0], sizes = [8, 32], strides = [1, 1]} : vector<8x96xf32> to vector<8x32xf32>
    %268 = arith.mulf %267, %264 : vector<8x32xf32>
    %269 = arith.addf %266, %268 : vector<8x32xf32>
    %270 = vector.extract_strided_slice %262 {offsets = [0, 64], sizes = [8, 32], strides = [1, 1]} : vector<8x96xf32> to vector<8x32xf32>
    %271 = math.tanh %269 : vector<8x32xf32>
    %272 = arith.mulf %270, %271 : vector<8x32xf32>
    %c7_129 = arith.constant 7 : index
    %c0_130 = arith.constant 0 : index
    %c0_131 = arith.constant 0 : index
    %273 = vector.load %arg9[%c7_129, %c0_130, %c0_131] : memref<8x8x32xf32, #tpu.memory_space<vmem>>, vector<1x8x32xf32>
    %274 = vector.shape_cast %273 : vector<1x8x32xf32> to vector<8x32xf32>
    %275 = vector.extract_strided_slice %272 {offsets = [0, 0], sizes = [8, 16], strides = [1, 1]} : vector<8x32xf32> to vector<8x16xf32>
    %cst_132 = arith.constant dense<0.000000e+00> : vector<8x32xf32>
    %276 = tpu.matmul %275, %6, %cst_132 {dimension_numbers = #tpu.dot_dimension_numbers<[1], [0], [0], [1], [0, 0, 1, 1], [], []>} : vector<8x16xf32>, vector<16x32xf32>, vector<8x32xf32> -> vector<8x32xf32>
    %277 = arith.addf %274, %276 : vector<8x32xf32>
    %c7_133 = arith.constant 7 : index
    %c0_134 = arith.constant 0 : index
    %c0_135 = arith.constant 0 : index
    %278 = vector.load %arg9[%c7_133, %c0_134, %c0_135] : memref<8x8x32xf32, #tpu.memory_space<vmem>>, vector<1x8x32xf32>
    %279 = vector.shape_cast %278 : vector<1x8x32xf32> to vector<8x32xf32>
    %280 = vector.shape_cast %277 : vector<8x32xf32> to vector<1x8x32xf32>
    tpu.vector_store %arg9[%c7_133, %c0_134, %c0_135], %280 {strides = array<i32>} : memref<8x8x32xf32, #tpu.memory_space<vmem>>, vector<1x8x32xf32>,
    %c0_136 = arith.constant 0 : index
    %c0_137 = arith.constant 0 : index
    %c0_138 = arith.constant 0 : index
    %281 = vector.load %arg9[%c0_136, %c0_137, %c0_138] : memref<8x8x32xf32, #tpu.memory_space<vmem>>, vector<1x8x32xf32>
    %282 = vector.shape_cast %281 : vector<1x8x32xf32> to vector<8x32xf32>
    %283 = vector.extract_strided_slice %272 {offsets = [0, 16], sizes = [8, 16], strides = [1, 1]} : vector<8x32xf32> to vector<8x16xf32>
    %cst_139 = arith.constant dense<0.000000e+00> : vector<8x32xf32>
    %284 = tpu.matmul %283, %7, %cst_139 {dimension_numbers = #tpu.dot_dimension_numbers<[1], [0], [0], [1], [0, 0, 1, 1], [], []>} : vector<8x16xf32>, vector<16x32xf32>, vector<8x32xf32> -> vector<8x32xf32>
    %285 = arith.addf %282, %284 : vector<8x32xf32>
    %c0_140 = arith.constant 0 : index
    %c0_141 = arith.constant 0 : index
    %c0_142 = arith.constant 0 : index
    %286 = vector.load %arg9[%c0_140, %c0_141, %c0_142] : memref<8x8x32xf32, #tpu.memory_space<vmem>>, vector<1x8x32xf32>
    %287 = vector.shape_cast %286 : vector<1x8x32xf32> to vector<8x32xf32>
    %288 = vector.shape_cast %285 : vector<8x32xf32> to vector<1x8x32xf32>
    tpu.vector_store %arg9[%c0_140, %c0_141, %c0_142], %288 {strides = array<i32>} : memref<8x8x32xf32, #tpu.memory_space<vmem>>, vector<1x8x32xf32>,
    %c0_143 = arith.constant 0 : index
    %c0_144 = arith.constant 0 : index
    %c0_145 = arith.constant 0 : index
    %289 = vector.load %arg9[%c0_143, %c0_144, %c0_145] : memref<8x8x32xf32, #tpu.memory_space<vmem>>, vector<1x8x32xf32>
    %290 = vector.shape_cast %289 : vector<1x8x32xf32> to vector<8x32xf32>
    %291 = vector.broadcast %9 : vector<1x32xf32> to vector<8x32xf32>
    %292 = arith.addf %290, %291 : vector<8x32xf32>
    %cst_146 = arith.constant dense<0.000000e+00> : vector<8x32xf32>
    %293 = tpu.matmul %15, %8, %cst_146 {dimension_numbers = #tpu.dot_dimension_numbers<[1], [0], [0], [1], [0, 0, 1, 1], [], []>} : vector<8x8xf32>, vector<8x32xf32>, vector<8x32xf32> -> vector<8x32xf32>
    %294 = arith.addf %292, %293 : vector<8x32xf32>
    %295 = vector.extract_strided_slice %294 {offsets = [0, 0], sizes = [8, 24], strides = [1, 1]} : vector<8x32xf32> to vector<8x24xf32>
    %296 = arith.negf %295 : vector<8x24xf32>
    %297 = math.exp %296 : vector<8x24xf32>
    %cst_147 = arith.constant 1.000000e+00 : f32
    %298 = vector.broadcast %cst_147 : f32 to vector<8x24xf32>
    %299 = arith.addf %298, %297 : vector<8x24xf32>
    %300 = arith.divf %298, %299 : vector<8x24xf32>
    %301 = vector.extract_strided_slice %294 {offsets = [0, 24], sizes = [8, 8], strides = [1, 1]} : vector<8x32xf32> to vector<8x8xf32>
    %302 = math.tanh %301 : vector<8x8xf32>
    %303 = vector.extract_strided_slice %300 {offsets = [0, 8], sizes = [8, 8], strides = [1, 1]} : vector<8x24xf32> to vector<8x8xf32>
    %304 = arith.mulf %303, %16 : vector<8x8xf32>
    %305 = vector.extract_strided_slice %300 {offsets = [0, 0], sizes = [8, 8], strides = [1, 1]} : vector<8x24xf32> to vector<8x8xf32>
    %306 = arith.mulf %305, %302 : vector<8x8xf32>
    %307 = arith.addf %304, %306 : vector<8x8xf32>
    %308 = vector.extract_strided_slice %300 {offsets = [0, 16], sizes = [8, 8], strides = [1, 1]} : vector<8x24xf32> to vector<8x8xf32>
    %309 = math.tanh %307 : vector<8x8xf32>
    %310 = arith.mulf %308, %309 : vector<8x8xf32>
    %c0_148 = arith.constant 0 : index
    %c0_149 = arith.constant 0 : index
    %c0_150 = arith.constant 0 : index
    %311 = vector.load %arg8[%c0_148, %c0_149, %c0_150] : memref<8x8x8xf32, #tpu.memory_space<vmem>>, vector<1x8x8xf32>
    %312 = vector.shape_cast %311 : vector<1x8x8xf32> to vector<8x8xf32>
    %313 = vector.shape_cast %310 : vector<8x8xf32> to vector<1x8x8xf32>
    tpu.vector_store %arg8[%c0_148, %c0_149, %c0_150], %313 {strides = array<i32>} : memref<8x8x8xf32, #tpu.memory_space<vmem>>, vector<1x8x8xf32>,
    %c1_151 = arith.constant 1 : index
    %c0_152 = arith.constant 0 : index
    %c0_153 = arith.constant 0 : index
    %314 = vector.load %arg9[%c1_151, %c0_152, %c0_153] : memref<8x8x32xf32, #tpu.memory_space<vmem>>, vector<1x8x32xf32>
    %315 = vector.shape_cast %314 : vector<1x8x32xf32> to vector<8x32xf32>
    %316 = vector.broadcast %9 : vector<1x32xf32> to vector<8x32xf32>
    %317 = arith.addf %315, %316 : vector<8x32xf32>
    %cst_154 = arith.constant dense<0.000000e+00> : vector<8x32xf32>
    %318 = tpu.matmul %310, %8, %cst_154 {dimension_numbers = #tpu.dot_dimension_numbers<[1], [0], [0], [1], [0, 0, 1, 1], [], []>} : vector<8x8xf32>, vector<8x32xf32>, vector<8x32xf32> -> vector<8x32xf32>
    %319 = arith.addf %317, %318 : vector<8x32xf32>
    %320 = vector.extract_strided_slice %319 {offsets = [0, 0], sizes = [8, 24], strides = [1, 1]} : vector<8x32xf32> to vector<8x24xf32>
    %321 = arith.negf %320 : vector<8x24xf32>
    %322 = math.exp %321 : vector<8x24xf32>
    %cst_155 = arith.constant 1.000000e+00 : f32
    %323 = vector.broadcast %cst_155 : f32 to vector<8x24xf32>
    %324 = arith.addf %323, %322 : vector<8x24xf32>
    %325 = arith.divf %323, %324 : vector<8x24xf32>
    %326 = vector.extract_strided_slice %319 {offsets = [0, 24], sizes = [8, 8], strides = [1, 1]} : vector<8x32xf32> to vector<8x8xf32>
    %327 = math.tanh %326 : vector<8x8xf32>
    %328 = vector.extract_strided_slice %325 {offsets = [0, 8], sizes = [8, 8], strides = [1, 1]} : vector<8x24xf32> to vector<8x8xf32>
    %329 = arith.mulf %328, %307 : vector<8x8xf32>
    %330 = vector.extract_strided_slice %325 {offsets = [0, 0], sizes = [8, 8], strides = [1, 1]} : vector<8x24xf32> to vector<8x8xf32>
    %331 = arith.mulf %330, %327 : vector<8x8xf32>
    %332 = arith.addf %329, %331 : vector<8x8xf32>
    %333 = vector.extract_strided_slice %325 {offsets = [0, 16], sizes = [8, 8], strides = [1, 1]} : vector<8x24xf32> to vector<8x8xf32>
    %334 = math.tanh %332 : vector<8x8xf32>
    %335 = arith.mulf %333, %334 : vector<8x8xf32>
    %c1_156 = arith.constant 1 : index
    %c0_157 = arith.constant 0 : index
    %c0_158 = arith.constant 0 : index
    %336 = vector.load %arg8[%c1_156, %c0_157, %c0_158] : memref<8x8x8xf32, #tpu.memory_space<vmem>>, vector<1x8x8xf32>
    %337 = vector.shape_cast %336 : vector<1x8x8xf32> to vector<8x8xf32>
    %338 = vector.shape_cast %335 : vector<8x8xf32> to vector<1x8x8xf32>
    tpu.vector_store %arg8[%c1_156, %c0_157, %c0_158], %338 {strides = array<i32>} : memref<8x8x8xf32, #tpu.memory_space<vmem>>, vector<1x8x8xf32>,
    %c2_159 = arith.constant 2 : index
    %c0_160 = arith.constant 0 : index
    %c0_161 = arith.constant 0 : index
    %339 = vector.load %arg9[%c2_159, %c0_160, %c0_161] : memref<8x8x32xf32, #tpu.memory_space<vmem>>, vector<1x8x32xf32>
    %340 = vector.shape_cast %339 : vector<1x8x32xf32> to vector<8x32xf32>
    %341 = vector.broadcast %9 : vector<1x32xf32> to vector<8x32xf32>
    %342 = arith.addf %340, %341 : vector<8x32xf32>
    %cst_162 = arith.constant dense<0.000000e+00> : vector<8x32xf32>
    %343 = tpu.matmul %335, %8, %cst_162 {dimension_numbers = #tpu.dot_dimension_numbers<[1], [0], [0], [1], [0, 0, 1, 1], [], []>} : vector<8x8xf32>, vector<8x32xf32>, vector<8x32xf32> -> vector<8x32xf32>
    %344 = arith.addf %342, %343 : vector<8x32xf32>
    %345 = vector.extract_strided_slice %344 {offsets = [0, 0], sizes = [8, 24], strides = [1, 1]} : vector<8x32xf32> to vector<8x24xf32>
    %346 = arith.negf %345 : vector<8x24xf32>
    %347 = math.exp %346 : vector<8x24xf32>
    %cst_163 = arith.constant 1.000000e+00 : f32
    %348 = vector.broadcast %cst_163 : f32 to vector<8x24xf32>
    %349 = arith.addf %348, %347 : vector<8x24xf32>
    %350 = arith.divf %348, %349 : vector<8x24xf32>
    %351 = vector.extract_strided_slice %344 {offsets = [0, 24], sizes = [8, 8], strides = [1, 1]} : vector<8x32xf32> to vector<8x8xf32>
    %352 = math.tanh %351 : vector<8x8xf32>
    %353 = vector.extract_strided_slice %350 {offsets = [0, 8], sizes = [8, 8], strides = [1, 1]} : vector<8x24xf32> to vector<8x8xf32>
    %354 = arith.mulf %353, %332 : vector<8x8xf32>
    %355 = vector.extract_strided_slice %350 {offsets = [0, 0], sizes = [8, 8], strides = [1, 1]} : vector<8x24xf32> to vector<8x8xf32>
    %356 = arith.mulf %355, %352 : vector<8x8xf32>
    %357 = arith.addf %354, %356 : vector<8x8xf32>
    %358 = vector.extract_strided_slice %350 {offsets = [0, 16], sizes = [8, 8], strides = [1, 1]} : vector<8x24xf32> to vector<8x8xf32>
    %359 = math.tanh %357 : vector<8x8xf32>
    %360 = arith.mulf %358, %359 : vector<8x8xf32>
    %c2_164 = arith.constant 2 : index
    %c0_165 = arith.constant 0 : index
    %c0_166 = arith.constant 0 : index
    %361 = vector.load %arg8[%c2_164, %c0_165, %c0_166] : memref<8x8x8xf32, #tpu.memory_space<vmem>>, vector<1x8x8xf32>
    %362 = vector.shape_cast %361 : vector<1x8x8xf32> to vector<8x8xf32>
    %363 = vector.shape_cast %360 : vector<8x8xf32> to vector<1x8x8xf32>
    tpu.vector_store %arg8[%c2_164, %c0_165, %c0_166], %363 {strides = array<i32>} : memref<8x8x8xf32, #tpu.memory_space<vmem>>, vector<1x8x8xf32>,
    %c3_167 = arith.constant 3 : index
    %c0_168 = arith.constant 0 : index
    %c0_169 = arith.constant 0 : index
    %364 = vector.load %arg9[%c3_167, %c0_168, %c0_169] : memref<8x8x32xf32, #tpu.memory_space<vmem>>, vector<1x8x32xf32>
    %365 = vector.shape_cast %364 : vector<1x8x32xf32> to vector<8x32xf32>
    %366 = vector.broadcast %9 : vector<1x32xf32> to vector<8x32xf32>
    %367 = arith.addf %365, %366 : vector<8x32xf32>
    %cst_170 = arith.constant dense<0.000000e+00> : vector<8x32xf32>
    %368 = tpu.matmul %360, %8, %cst_170 {dimension_numbers = #tpu.dot_dimension_numbers<[1], [0], [0], [1], [0, 0, 1, 1], [], []>} : vector<8x8xf32>, vector<8x32xf32>, vector<8x32xf32> -> vector<8x32xf32>
    %369 = arith.addf %367, %368 : vector<8x32xf32>
    %370 = vector.extract_strided_slice %369 {offsets = [0, 0], sizes = [8, 24], strides = [1, 1]} : vector<8x32xf32> to vector<8x24xf32>
    %371 = arith.negf %370 : vector<8x24xf32>
    %372 = math.exp %371 : vector<8x24xf32>
    %cst_171 = arith.constant 1.000000e+00 : f32
    %373 = vector.broadcast %cst_171 : f32 to vector<8x24xf32>
    %374 = arith.addf %373, %372 : vector<8x24xf32>
    %375 = arith.divf %373, %374 : vector<8x24xf32>
    %376 = vector.extract_strided_slice %369 {offsets = [0, 24], sizes = [8, 8], strides = [1, 1]} : vector<8x32xf32> to vector<8x8xf32>
    %377 = math.tanh %376 : vector<8x8xf32>
    %378 = vector.extract_strided_slice %375 {offsets = [0, 8], sizes = [8, 8], strides = [1, 1]} : vector<8x24xf32> to vector<8x8xf32>
    %379 = arith.mulf %378, %357 : vector<8x8xf32>
    %380 = vector.extract_strided_slice %375 {offsets = [0, 0], sizes = [8, 8], strides = [1, 1]} : vector<8x24xf32> to vector<8x8xf32>
    %381 = arith.mulf %380, %377 : vector<8x8xf32>
    %382 = arith.addf %379, %381 : vector<8x8xf32>
    %383 = vector.extract_strided_slice %375 {offsets = [0, 16], sizes = [8, 8], strides = [1, 1]} : vector<8x24xf32> to vector<8x8xf32>
    %384 = math.tanh %382 : vector<8x8xf32>
    %385 = arith.mulf %383, %384 : vector<8x8xf32>
    %c3_172 = arith.constant 3 : index
    %c0_173 = arith.constant 0 : index
    %c0_174 = arith.constant 0 : index
    %386 = vector.load %arg8[%c3_172, %c0_173, %c0_174] : memref<8x8x8xf32, #tpu.memory_space<vmem>>, vector<1x8x8xf32>
    %387 = vector.shape_cast %386 : vector<1x8x8xf32> to vector<8x8xf32>
    %388 = vector.shape_cast %385 : vector<8x8xf32> to vector<1x8x8xf32>
    tpu.vector_store %arg8[%c3_172, %c0_173, %c0_174], %388 {strides = array<i32>} : memref<8x8x8xf32, #tpu.memory_space<vmem>>, vector<1x8x8xf32>,
    %c4_175 = arith.constant 4 : index
    %c0_176 = arith.constant 0 : index
    %c0_177 = arith.constant 0 : index
    %389 = vector.load %arg9[%c4_175, %c0_176, %c0_177] : memref<8x8x32xf32, #tpu.memory_space<vmem>>, vector<1x8x32xf32>
    %390 = vector.shape_cast %389 : vector<1x8x32xf32> to vector<8x32xf32>
    %391 = vector.broadcast %9 : vector<1x32xf32> to vector<8x32xf32>
    %392 = arith.addf %390, %391 : vector<8x32xf32>
    %cst_178 = arith.constant dense<0.000000e+00> : vector<8x32xf32>
    %393 = tpu.matmul %385, %8, %cst_178 {dimension_numbers = #tpu.dot_dimension_numbers<[1], [0], [0], [1], [0, 0, 1, 1], [], []>} : vector<8x8xf32>, vector<8x32xf32>, vector<8x32xf32> -> vector<8x32xf32>
    %394 = arith.addf %392, %393 : vector<8x32xf32>
    %395 = vector.extract_strided_slice %394 {offsets = [0, 0], sizes = [8, 24], strides = [1, 1]} : vector<8x32xf32> to vector<8x24xf32>
    %396 = arith.negf %395 : vector<8x24xf32>
    %397 = math.exp %396 : vector<8x24xf32>
    %cst_179 = arith.constant 1.000000e+00 : f32
    %398 = vector.broadcast %cst_179 : f32 to vector<8x24xf32>
    %399 = arith.addf %398, %397 : vector<8x24xf32>
    %400 = arith.divf %398, %399 : vector<8x24xf32>
    %401 = vector.extract_strided_slice %394 {offsets = [0, 24], sizes = [8, 8], strides = [1, 1]} : vector<8x32xf32> to vector<8x8xf32>
    %402 = math.tanh %401 : vector<8x8xf32>
    %403 = vector.extract_strided_slice %400 {offsets = [0, 8], sizes = [8, 8], strides = [1, 1]} : vector<8x24xf32> to vector<8x8xf32>
    %404 = arith.mulf %403, %382 : vector<8x8xf32>
    %405 = vector.extract_strided_slice %400 {offsets = [0, 0], sizes = [8, 8], strides = [1, 1]} : vector<8x24xf32> to vector<8x8xf32>
    %406 = arith.mulf %405, %402 : vector<8x8xf32>
    %407 = arith.addf %404, %406 : vector<8x8xf32>
    %408 = vector.extract_strided_slice %400 {offsets = [0, 16], sizes = [8, 8], strides = [1, 1]} : vector<8x24xf32> to vector<8x8xf32>
    %409 = math.tanh %407 : vector<8x8xf32>
    %410 = arith.mulf %408, %409 : vector<8x8xf32>
    %c4_180 = arith.constant 4 : index
    %c0_181 = arith.constant 0 : index
    %c0_182 = arith.constant 0 : index
    %411 = vector.load %arg8[%c4_180, %c0_181, %c0_182] : memref<8x8x8xf32, #tpu.memory_space<vmem>>, vector<1x8x8xf32>
    %412 = vector.shape_cast %411 : vector<1x8x8xf32> to vector<8x8xf32>
    %413 = vector.shape_cast %410 : vector<8x8xf32> to vector<1x8x8xf32>
    tpu.vector_store %arg8[%c4_180, %c0_181, %c0_182], %413 {strides = array<i32>} : memref<8x8x8xf32, #tpu.memory_space<vmem>>, vector<1x8x8xf32>,
    %c5_183 = arith.constant 5 : index
    %c0_184 = arith.constant 0 : index
    %c0_185 = arith.constant 0 : index
    %414 = vector.load %arg9[%c5_183, %c0_184, %c0_185] : memref<8x8x32xf32, #tpu.memory_space<vmem>>, vector<1x8x32xf32>
    %415 = vector.shape_cast %414 : vector<1x8x32xf32> to vector<8x32xf32>
    %416 = vector.broadcast %9 : vector<1x32xf32> to vector<8x32xf32>
    %417 = arith.addf %415, %416 : vector<8x32xf32>
    %cst_186 = arith.constant dense<0.000000e+00> : vector<8x32xf32>
    %418 = tpu.matmul %410, %8, %cst_186 {dimension_numbers = #tpu.dot_dimension_numbers<[1], [0], [0], [1], [0, 0, 1, 1], [], []>} : vector<8x8xf32>, vector<8x32xf32>, vector<8x32xf32> -> vector<8x32xf32>
    %419 = arith.addf %417, %418 : vector<8x32xf32>
    %420 = vector.extract_strided_slice %419 {offsets = [0, 0], sizes = [8, 24], strides = [1, 1]} : vector<8x32xf32> to vector<8x24xf32>
    %421 = arith.negf %420 : vector<8x24xf32>
    %422 = math.exp %421 : vector<8x24xf32>
    %cst_187 = arith.constant 1.000000e+00 : f32
    %423 = vector.broadcast %cst_187 : f32 to vector<8x24xf32>
    %424 = arith.addf %423, %422 : vector<8x24xf32>
    %425 = arith.divf %423, %424 : vector<8x24xf32>
    %426 = vector.extract_strided_slice %419 {offsets = [0, 24], sizes = [8, 8], strides = [1, 1]} : vector<8x32xf32> to vector<8x8xf32>
    %427 = math.tanh %426 : vector<8x8xf32>
    %428 = vector.extract_strided_slice %425 {offsets = [0, 8], sizes = [8, 8], strides = [1, 1]} : vector<8x24xf32> to vector<8x8xf32>
    %429 = arith.mulf %428, %407 : vector<8x8xf32>
    %430 = vector.extract_strided_slice %425 {offsets = [0, 0], sizes = [8, 8], strides = [1, 1]} : vector<8x24xf32> to vector<8x8xf32>
    %431 = arith.mulf %430, %427 : vector<8x8xf32>
    %432 = arith.addf %429, %431 : vector<8x8xf32>
    %433 = vector.extract_strided_slice %425 {offsets = [0, 16], sizes = [8, 8], strides = [1, 1]} : vector<8x24xf32> to vector<8x8xf32>
    %434 = math.tanh %432 : vector<8x8xf32>
    %435 = arith.mulf %433, %434 : vector<8x8xf32>
    %c5_188 = arith.constant 5 : index
    %c0_189 = arith.constant 0 : index
    %c0_190 = arith.constant 0 : index
    %436 = vector.load %arg8[%c5_188, %c0_189, %c0_190] : memref<8x8x8xf32, #tpu.memory_space<vmem>>, vector<1x8x8xf32>
    %437 = vector.shape_cast %436 : vector<1x8x8xf32> to vector<8x8xf32>
    %438 = vector.shape_cast %435 : vector<8x8xf32> to vector<1x8x8xf32>
    tpu.vector_store %arg8[%c5_188, %c0_189, %c0_190], %438 {strides = array<i32>} : memref<8x8x8xf32, #tpu.memory_space<vmem>>, vector<1x8x8xf32>,
    %c6_191 = arith.constant 6 : index
    %c0_192 = arith.constant 0 : index
    %c0_193 = arith.constant 0 : index
    %439 = vector.load %arg9[%c6_191, %c0_192, %c0_193] : memref<8x8x32xf32, #tpu.memory_space<vmem>>, vector<1x8x32xf32>
    %440 = vector.shape_cast %439 : vector<1x8x32xf32> to vector<8x32xf32>
    %441 = vector.broadcast %9 : vector<1x32xf32> to vector<8x32xf32>
    %442 = arith.addf %440, %441 : vector<8x32xf32>
    %cst_194 = arith.constant dense<0.000000e+00> : vector<8x32xf32>
    %443 = tpu.matmul %435, %8, %cst_194 {dimension_numbers = #tpu.dot_dimension_numbers<[1], [0], [0], [1], [0, 0, 1, 1], [], []>} : vector<8x8xf32>, vector<8x32xf32>, vector<8x32xf32> -> vector<8x32xf32>
    %444 = arith.addf %442, %443 : vector<8x32xf32>
    %445 = vector.extract_strided_slice %444 {offsets = [0, 0], sizes = [8, 24], strides = [1, 1]} : vector<8x32xf32> to vector<8x24xf32>
    %446 = arith.negf %445 : vector<8x24xf32>
    %447 = math.exp %446 : vector<8x24xf32>
    %cst_195 = arith.constant 1.000000e+00 : f32
    %448 = vector.broadcast %cst_195 : f32 to vector<8x24xf32>
    %449 = arith.addf %448, %447 : vector<8x24xf32>
    %450 = arith.divf %448, %449 : vector<8x24xf32>
    %451 = vector.extract_strided_slice %444 {offsets = [0, 24], sizes = [8, 8], strides = [1, 1]} : vector<8x32xf32> to vector<8x8xf32>
    %452 = math.tanh %451 : vector<8x8xf32>
    %453 = vector.extract_strided_slice %450 {offsets = [0, 8], sizes = [8, 8], strides = [1, 1]} : vector<8x24xf32> to vector<8x8xf32>
    %454 = arith.mulf %453, %432 : vector<8x8xf32>
    %455 = vector.extract_strided_slice %450 {offsets = [0, 0], sizes = [8, 8], strides = [1, 1]} : vector<8x24xf32> to vector<8x8xf32>
    %456 = arith.mulf %455, %452 : vector<8x8xf32>
    %457 = arith.addf %454, %456 : vector<8x8xf32>
    %458 = vector.extract_strided_slice %450 {offsets = [0, 16], sizes = [8, 8], strides = [1, 1]} : vector<8x24xf32> to vector<8x8xf32>
    %459 = math.tanh %457 : vector<8x8xf32>
    %460 = arith.mulf %458, %459 : vector<8x8xf32>
    %c6_196 = arith.constant 6 : index
    %c0_197 = arith.constant 0 : index
    %c0_198 = arith.constant 0 : index
    %461 = vector.load %arg8[%c6_196, %c0_197, %c0_198] : memref<8x8x8xf32, #tpu.memory_space<vmem>>, vector<1x8x8xf32>
    %462 = vector.shape_cast %461 : vector<1x8x8xf32> to vector<8x8xf32>
    %463 = vector.shape_cast %460 : vector<8x8xf32> to vector<1x8x8xf32>
    tpu.vector_store %arg8[%c6_196, %c0_197, %c0_198], %463 {strides = array<i32>} : memref<8x8x8xf32, #tpu.memory_space<vmem>>, vector<1x8x8xf32>,
    %c7_199 = arith.constant 7 : index
    %c0_200 = arith.constant 0 : index
    %c0_201 = arith.constant 0 : index
    %464 = vector.load %arg9[%c7_199, %c0_200, %c0_201] : memref<8x8x32xf32, #tpu.memory_space<vmem>>, vector<1x8x32xf32>
    %465 = vector.shape_cast %464 : vector<1x8x32xf32> to vector<8x32xf32>
    %466 = vector.broadcast %9 : vector<1x32xf32> to vector<8x32xf32>
    %467 = arith.addf %465, %466 : vector<8x32xf32>
    %cst_202 = arith.constant dense<0.000000e+00> : vector<8x32xf32>
    %468 = tpu.matmul %460, %8, %cst_202 {dimension_numbers = #tpu.dot_dimension_numbers<[1], [0], [0], [1], [0, 0, 1, 1], [], []>} : vector<8x8xf32>, vector<8x32xf32>, vector<8x32xf32> -> vector<8x32xf32>
    %469 = arith.addf %467, %468 : vector<8x32xf32>
    %470 = vector.extract_strided_slice %469 {offsets = [0, 0], sizes = [8, 24], strides = [1, 1]} : vector<8x32xf32> to vector<8x24xf32>
    %471 = arith.negf %470 : vector<8x24xf32>
    %472 = math.exp %471 : vector<8x24xf32>
    %cst_203 = arith.constant 1.000000e+00 : f32
    %473 = vector.broadcast %cst_203 : f32 to vector<8x24xf32>
    %474 = arith.addf %473, %472 : vector<8x24xf32>
    %475 = arith.divf %473, %474 : vector<8x24xf32>
    %476 = vector.extract_strided_slice %469 {offsets = [0, 24], sizes = [8, 8], strides = [1, 1]} : vector<8x32xf32> to vector<8x8xf32>
    %477 = math.tanh %476 : vector<8x8xf32>
    %478 = vector.extract_strided_slice %475 {offsets = [0, 8], sizes = [8, 8], strides = [1, 1]} : vector<8x24xf32> to vector<8x8xf32>
    %479 = arith.mulf %478, %457 : vector<8x8xf32>
    %480 = vector.extract_strided_slice %475 {offsets = [0, 0], sizes = [8, 8], strides = [1, 1]} : vector<8x24xf32> to vector<8x8xf32>
    %481 = arith.mulf %480, %477 : vector<8x8xf32>
    %482 = arith.addf %479, %481 : vector<8x8xf32>
    %483 = vector.extract_strided_slice %475 {offsets = [0, 16], sizes = [8, 8], strides = [1, 1]} : vector<8x24xf32> to vector<8x8xf32>
    %484 = math.tanh %482 : vector<8x8xf32>
    %485 = arith.mulf %483, %484 : vector<8x8xf32>
    %c7_204 = arith.constant 7 : index
    %c0_205 = arith.constant 0 : index
    %c0_206 = arith.constant 0 : index
    %486 = vector.load %arg8[%c7_204, %c0_205, %c0_206] : memref<8x8x8xf32, #tpu.memory_space<vmem>>, vector<1x8x8xf32>
    %487 = vector.shape_cast %486 : vector<1x8x8xf32> to vector<8x8xf32>
    %488 = vector.shape_cast %485 : vector<8x8xf32> to vector<1x8x8xf32>
    tpu.vector_store %arg8[%c7_204, %c0_205, %c0_206], %488 {strides = array<i32>} : memref<8x8x8xf32, #tpu.memory_space<vmem>>, vector<1x8x8xf32>,
    return
  }
  func.func @transform_0(%arg0: i32) -> (i32, i32) {
    %c0_i32 = arith.constant 0 : i32
    %c0_i32_0 = arith.constant 0 : i32
    return %arg0, %c0_i32 : i32, i32
  }
  func.func @transform_1(%arg0: i32) -> (i32, i32) {
    %c0_i32 = arith.constant 0 : i32
    %c0_i32_0 = arith.constant 0 : i32
    %c0_i32_1 = arith.constant 0 : i32
    return %c0_i32, %c0_i32_0 : i32, i32
  }
  func.func @transform_2(%arg0: i32) -> (i32, i32) {
    %c0_i32 = arith.constant 0 : i32
    %c0_i32_0 = arith.constant 0 : i32
    %c0_i32_1 = arith.constant 0 : i32
    return %c0_i32, %c0_i32_0 : i32, i32
  }
  func.func @transform_3(%arg0: i32) -> (i32, i32) {
    %c0_i32 = arith.constant 0 : i32
    %c0_i32_0 = arith.constant 0 : i32
    %c0_i32_1 = arith.constant 0 : i32
    return %c0_i32, %c0_i32_0 : i32, i32
  }
  func.func @transform_4(%arg0: i32) -> (i32, i32) {
    %c0_i32 = arith.constant 0 : i32
    %c0_i32_0 = arith.constant 0 : i32
    %c0_i32_1 = arith.constant 0 : i32
    return %c0_i32, %c0_i32_0 : i32, i32
  }
  func.func @transform_5(%arg0: i32) -> (i32, i32) {
    %c0_i32 = arith.constant 0 : i32
    %c0_i32_0 = arith.constant 0 : i32
    %c0_i32_1 = arith.constant 0 : i32
    return %c0_i32, %c0_i32_0 : i32, i32
  }
  func.func @transform_6(%arg0: i32) -> (i32, i32) {
    %c0_i32 = arith.constant 0 : i32
    %c0_i32_0 = arith.constant 0 : i32
    %c0_i32_1 = arith.constant 0 : i32
    return %c0_i32, %c0_i32_0 : i32, i32
  }
  func.func @transform_7(%arg0: i32) -> (i32, i32, i32) {
    %c0_i32 = arith.constant 0 : i32
    %c0_i32_0 = arith.constant 0 : i32
    %c0_i32_1 = arith.constant 0 : i32
    return %c0_i32, %arg0, %c0_i32_0 : i32, i32, i32
  }
}

</mosaic_0001>

<bundles_post_ra>
// kernel: decoder_forward.1
= control target key start
LH: loop header
LB: loop body
LE: loop exit
PB: predicated region body
PF: predicated region fallthrough
CT: control target
= control target key end

     0   :  { %s4109_s24 = smov 0   ;;  %s4111_s25 = smov 0   ;;  %s4587_s0 = inlined_call_operand.vmem [shape: f32[16,8], index: 0, kind: input, shape index: {}]   ;;  %s4588_s1 = inlined_call_operand.vmem [shape: f32[8,128], index: 1, kind: input, shape index: {}]   ;;  %s4589_s2 = inlined_call_operand.vmem [shape: f32[1,128], index: 2, kind: input, shape index: {}]   ;;  %s4590_s3 = inlined_call_operand.vmem [shape: f32[32,128], index: 3, kind: input, shape index: {}]   ;;  %s4591_s4 = inlined_call_operand.vmem [shape: f32[32,32], index: 4, kind: input, shape index: {}]   ;;  %s4592_s5 = inlined_call_operand.vmem [shape: f32[8,32], index: 5, kind: input, shape index: {}]   ;;  %s4593_s6 = inlined_call_operand.vmem [shape: f32[1,32], index: 6, kind: input, shape index: {}]   ;;  %s4594_s7 = inlined_call_operand.vmem [shape: f32[8,16,8], index: 7, kind: output, shape index: {}]  }
   0x1   :  { %s4113_s26 = smov 0  }
   0x2 LB: > { %s4122_s27 = sadd.s32 4294967295, %s4058_s26   ;;  %s4124_s28 = sadd.s32 1, %s4058_s26   ;;  %s4058_s26 = sphi %s4113_s26, %s4598_s26   ;;  %s4054_s25 = sphi %s4111_s25, %s4597_s25   ;;  %s4050_s24 = sphi %s4109_s24, %s4596_s24  }
   0x3   : > { %s173_s29 = ssub.s32 %s4058_s26, %s4124_s28  ;;  %s176_s30 = sadd.s32 1, %s4054_s25 }
   0x4   : > { %p174_p0 = scmp.eq.s32.totalorder %s173_s29, 0  ;;  %p186_p1 = scmp.ne.s32.totalorder %s4054_s25, %s4050_s24 }
   0x5   : > { %p187_p2 = scmp.eq.s32.totalorder %s4122_s27, 1  ;;  %p3365_p3 = scmp.ge.s32.totalorder %s4058_s26, 1 }
   0x6   : > { %s4132_s8 = scalar_select %p174_p0, %s4054_s25, %s176_s30  }
   0x7   : > { %p4134_p4 = por %p187_p2, %p186_p1  ;;  %p236_p5 = scmp.lt.s32.totalorder %s4058_s26, 3 }
   0x9   : > { %p237_p6 = pnand %p3365_p3, %p236_p5 }
   0xa   : > { %v368_v0 = vld [vmem:[%s4590_s3] sm:$0xff] (!%p237_p6)  ;;  %v369_v1 = vld [vmem:[%s4590_s3 + $0x8] sm:$0xff] (!%p237_p6)  ;;  %v4060_v3 = vmov (!%p237_p6), 0.0|0.0   ;;  %v4061_v5 = vmov (!%p237_p6), 0.0   ;;  %p266_p7 = scmp.lt.s32.totalorder (!%p237_p6), %s4122_s27, 1  ;;  %v370_v6 = vld [vmem:[%s4590_s3 + $0x10] sm:$0xff] (!%p237_p6) }
   0xb   : > { %240 = sbr.rel (%p237_p6) target bundleno = 11282 (0x2c12), region = 48  ;;  %v271_v2 = vld [vmem:[%s4588_s1] sm:$0xff] (!%p237_p6)  ;;  %3779 = vmatprep.subr.bf16.mxu1 (!%p237_p6), %v4060_v3  ;;  %v4148_v4 = vpack.c.bf16 (!%p237_p6), %v369_v1, %v368_v0  ;;  %3534 = vmatprep.subr.mxu0 (!%p237_p6), %v4061_v5  ;;  %v371_v7 = vld [vmem:[%s4590_s3 + $0x18] sm:$0xff] (!%p237_p6)  ;;  %vm4062_vm0 = vmmov (!%p237_p6), 0   ;;  %vm279_vm1 = vcmask (!%p237_p6), 64512   ;;  %s4063_s10 = smov (!%p237_p6), 32  }
   0xc   : > { %3535 = vmatpush3.msra.mxu0 (!%p237_p6), %v271_v2  ;;  %3536 = vmatprep.mubr.msk.f32.mxu0 (!%p237_p6), %vm4062_vm0, %v4061_v5  ;;  %v4162_v8 = vpack.c.bf16 (!%p237_p6), %v371_v7, %v370_v6  ;;  %v3368_v10 = vld [vmem:[%s4589_s2] ss:$0 sm:$0xff] (!%p237_p6)  ;;  %v354_v28 = vld [vmem:[%s4591_s4 + $0x8] sm:$0xff] (!%p237_p6)  ;;  %vm359_vm2 = vcmask (!%p237_p6), 261120   ;;  %s4064_s15 = smov (!%p237_p6), 64   ;;  %vm474_vm3 = vcmask (!%p237_p6), 130048  }
   0xd   : > { %3781 = vmatpush3.bf16.msra.mxu1 (!%p237_p6), %v4148_v4  ;;  %3547 = vmatprep.mubr.msk.f32.mxu1 (!%p237_p6), %vm4062_vm0, %v4061_v5  ;;  %v353_v27 = vld [vmem:[%s4591_s4] sm:$0xff] (!%p237_p6)  ;;  %360 = vst.msk [vmem:[#allocation2] sm:$0xff] (!%p237_p6), %vm359_vm2, %v4061_v5  ;;  %361 = vst.msk [vmem:[#allocation2 + $0x8] sm:$0xff] (!%p237_p6), %vm359_vm2, %v4061_v5  ;;  %s4066_s29 = smov (!%p237_p6), 104   ;;  %s4067_s30 = smov (!%p237_p6), 8  }
   0xe   : > { %3782 = vmatprep.subr.bf16.mxu1 (!%p237_p6), %v4060_v3  ;;  %3785 = vmatprep.subr.bf16.mxu0 (!%p237_p6), %v4060_v3  ;;  %v4197_v29 = vpack.c.bf16 (!%p237_p6), %v354_v28, %v353_v27  ;;  %362 = vst.msk [vmem:[#allocation2 + $0x10] sm:$0xff] (!%p237_p6), %vm359_vm2, %v4061_v5  ;;  %363 = vst.msk [vmem:[#allocation2 + $0x18] sm:$0xff] (!%p237_p6), %vm359_vm2, %v4061_v5  ;;  %s263_s11 = sand.u32 (!%p237_p6), 1, %s4050_s24  }
   0xf   : > { %364 = vst.msk [vmem:[#allocation2 + $0x20] sm:$0xff] (!%p237_p6), %vm359_vm2, %v4061_v5  ;;  %365 = vst.msk [vmem:[#allocation2 + $0x28] sm:$0xff] (!%p237_p6), %vm359_vm2, %v4061_v5  ;;  %s3366_s12 = sshll.u32 (!%p237_p6), %s263_s11, 6 }
  0x10   : > { %366 = vst.msk [vmem:[#allocation2 + $0x30] sm:$0xff] (!%p237_p6), %vm359_vm2, %v4061_v5  ;;  %367 = vst.msk [vmem:[#allocation2 + $0x38] sm:$0xff] (!%p237_p6), %vm359_vm2, %v4061_v5  ;;  %s4485_s13 = scalar_lea.vmem (!%p237_p6), [#allocation3], %s3366_s12 }
  0x11   : > { %3784 = vmatpush3.bf16.msra.mxu1 (!%p237_p6), %v4162_v8 }
  0x12   : > { %s267_s20 = scalar_select %p266_p7, %s4122_s27, 1  ;;  %3791 = vmatprep.subr.bf16.mxu1 %v4060_v3 }
  0x13   : > { %s3425_s24 = sshll.u32 (%p4134_p4), %s4122_s27, 3 }
  0x14   : > { %s3367_s21 = sshll.u32 %s267_s20, 3  ;;  %3548 = vmatmul.mubr.f32.vlgmr.msra.gmra.mrb[0].mxu1 %v4061_v5  ;;  %v470_v34 = vld [vmem:[#allocation2] sm:$0xff]  ;;  %s4065_s20 = smov 48  }
  0x15   : > { %s269_s26 = scalar_lea.vmem %s4587_s0, %s3367_s21  ;;  %3793 = vmatpush3.bf16.msra.mxu1 %v4148_v4  ;;  %3572 = vmatprep.mubr.msk.f32.mxu1 %vm4062_vm0, %v4061_v5  ;;  %s3250_s16 = scalar_lea.vmem (%p4134_p4), %s4594_s7, %s3425_s24 }
  0x16   : > { %v270_v9 = vld [vmem:[%s269_s26] sm:$0xff]  ;;  %3794 = vmatprep.subr.bf16.mxu1 %v4060_v3 }
  0x17   : > { %3537 = vmatmul.mubr.msk.f32.vlgmr.msra.gmra.mrb[0].mxu0 %vm279_vm1, %v270_v9 }
  0x18   : > { %3554 = vmatprep.mubr.msk.f32.mxu0 %vm4062_vm0, %v4061_v5  ;;  %3787 = vmatpush3.bf16.msra.mxu0 %v4197_v29 }
  0x19   : > { %3796 = vmatpush3.bf16.msra.mxu1 %v4162_v8  ;;  %3788 = vmatprep.subr.bf16.mxu0 %v4060_v3 }
  0x1a   : > { %3803 = vmatprep.subr.bf16.mxu1 %v4060_v3 }
  0xe7   : > { %v441_v14 = vpop.f32.mrb[0].mxu1 }
  0xe8   : > { %v3549_v16 = vpop.f32.mrb[1].mxu1 }
  0xea   : > { %v349_v11 = vpop.f32.mrb[0].mxu0 }
  0xeb   : > { %v4186_v12 = vadd.f32 %v3368_v10, %v349_v11  ;;  %v3538_v13 = vpop.f32.mrb[1].mxu0 }
  0xed   : > { %v445_v15 = vadd.f32 %v441_v14, %v4186_v12 }
  0xef   : > { %3908 = vtanh.f32 %v445_v15  ;;  %v3370_v18 = vmul.f32 -1.442695, %v445_v15 }
  0xf1   : > { %3910 = vpow2.f32 %v3370_v18 }
  0xf9   : > { %v3909_v17 = vpop.eup %3908 }
  0xfa   : > { %455 = vrot.lane.b32.xlu0 %v3909_v17, %s4063_s10 }
  0xfb   : > { %v3911_v19 = vpop.eup %3910 }
  0xfc   : > { %v449_v20 = vadd.f32 1.0, %v3911_v19 }
  0xfe   : > { %3912 = vrcp.f32 %v449_v20 }
 0x108   : > { %v3913_v21 = vpop.eup %3912 }
 0x109   : > { %v453_v24 = vmul.f32 0.0, %v3913_v21 }
 0x16c   : > { %v456_v22 = vpop.permute.xlu0 %455 }
 0x16d   : > { %v458_v23 = vmul.f32 %v3913_v21, %v456_v22 }
 0x16f   : > { %460 = vrot.lane.b32.xlu0 %v458_v23, %s4063_s10 }
 0x1e1   : > { %v461_v25 = vpop.permute.xlu0 %460 }
 0x1e2   : > { %v463_v26 = vadd.f32 %v461_v25, %v453_v24 }
 0x1e4   : > { %3914 = vtanh.f32 %v463_v26 }
 0x1ee   : > { %v3915_v30 = vpop.eup %3914 }
 0x1ef   : > { %466 = vrot.lane.b32.xlu1 %v3915_v30, %s4063_s10 }
 0x261   : > { %v467_v31 = vpop.permute.xlu1 %466 }
 0x262   : > { %v4218_v32 = vmul.f32 %v3913_v21, %v467_v31 }
 0x264   : > { %472 = vrot.lane.b32.xlu1 %v4218_v32, %s4064_s15 }
 0x2d6   : > { %v473_v33 = vpop.permute.xlu1 %472 }
 0x2d7   : > { %3555 = vmatmul.mubr.msk.f32.vlgmr.msra.gmra.mrb[2].mxu0 %vm474_vm3, %v473_v33  ;;  %3573 = vmatmul.mubr.msk.f32.vlgmr.msra.gmra.mrb[2].mxu1 %vm359_vm2, %v473_v33 }
 0x2d8   : > { %3805 = vmatpush3.bf16.msra.mxu1 %v4148_v4  ;;  %3597 = vmatprep.mubr.msk.f32.mxu1 %vm4062_vm0, %v4061_v5 }
 0x2d9   : > { %3806 = vmatprep.subr.bf16.mxu1 %v4060_v3  ;;  %3561 = vmatprep.mubr.msk.f32.mxu0 %vm4062_vm0, %v4061_v5 }
 0x2dc   : > { %3808 = vmatpush3.bf16.msra.mxu1 %v4162_v8 }
 0x2dd   : > { %3815 = vmatprep.subr.bf16.mxu1 %v4060_v3 }
 0x3aa   : > { %v543_v35 = vpop.f32.mrb[2].mxu0  ;;  %v695_v36 = vpop.f32.mrb[2].mxu1 }
 0x3ab   : > { %v547_v37 = vadd.f32 %v543_v35, %v470_v34  ;;  %v699_v38 = vadd.f32 %v695_v36, %v4186_v12  ;;  %v3556_v39 = vpop.f32.mrb[3].mxu0  ;;  %v3574_v40 = vpop.f32.mrb[3].mxu1 }
 0x3ad   : > { %548 = vst.msk [vmem:[#allocation2] sm:$0xff] %vm359_vm2, %v547_v37  ;;  %3916 = vtanh.f32 %v699_v38  ;;  %v3374_v42 = vmul.f32 -1.442695, %v699_v38 }
 0x3af   : > { %3918 = vpow2.f32 %v3374_v42 }
 0x3b7   : > { %v3917_v41 = vpop.eup %3916 }
 0x3b8   : > { %709 = vrot.lane.b32.xlu0 %v3917_v41, %s4063_s10 }
 0x3b9   : > { %v3919_v43 = vpop.eup %3918 }
 0x3ba   : > { %v703_v44 = vadd.f32 1.0, %v3919_v43 }
 0x3bc   : > { %3920 = vrcp.f32 %v703_v44 }
 0x3c6   : > { %v3921_v45 = vpop.eup %3920 }
 0x3c7   : > { %v707_v48 = vmul.f32 %v3921_v45, %v463_v26 }
 0x42a   : > { %v710_v46 = vpop.permute.xlu0 %709 }
 0x42b   : > { %v712_v47 = vmul.f32 %v3921_v45, %v710_v46 }
 0x42d   : > { %714 = vrot.lane.b32.xlu1 %v712_v47, %s4063_s10 }
 0x49f   : > { %v715_v49 = vpop.permute.xlu1 %714 }
 0x4a0   : > { %v717_v50 = vadd.f32 %v715_v49, %v707_v48 }
 0x4a2   : > { %3922 = vtanh.f32 %v717_v50 }
 0x4ac   : > { %v3923_v51 = vpop.eup %3922 }
 0x4ad   : > { %720 = vrot.lane.b32.xlu0 %v3923_v51, %s4063_s10 }
 0x51f   : > { %v721_v52 = vpop.permute.xlu0 %720 }
 0x520   : > { %v4237_v53 = vmul.f32 %v3921_v45, %v721_v52 }
 0x522   : > { %727 = vrot.lane.b32.xlu1 %v4237_v53, %s4064_s15 }
 0x594   : > { %v4241_v54 = vpop.permute.xlu1 %727 }
 0x595   : > { %3598 = vmatmul.mubr.msk.f32.vlgmr.msra.gmra.mrb[4].mxu1 %vm359_vm2, %v4241_v54 }
 0x596   : > { %3817 = vmatpush3.bf16.msra.mxu1 %v4148_v4  ;;  %3622 = vmatprep.mubr.msk.f32.mxu1 %vm4062_vm0, %v4061_v5 }
 0x597   : > { %3818 = vmatprep.subr.bf16.mxu1 %v4060_v3 }
 0x59a   : > { %3820 = vmatpush3.bf16.msra.mxu1 %v4162_v8 }
 0x59b   : > { %3827 = vmatprep.subr.bf16.mxu1 %v4060_v3 }
 0x668   : > { %v949_v55 = vpop.f32.mrb[4].mxu1 }
 0x669   : > { %v953_v56 = vadd.f32 %v949_v55, %v4186_v12  ;;  %v3599_v57 = vpop.f32.mrb[5].mxu1 }
 0x66b   : > { %3924 = vtanh.f32 %v953_v56  ;;  %v3378_v59 = vmul.f32 -1.442695, %v953_v56 }
 0x66d   : > { %3926 = vpow2.f32 %v3378_v59 }
 0x675   : > { %v3925_v58 = vpop.eup %3924 }
 0x676   : > { %963 = vrot.lane.b32.xlu0 %v3925_v58, %s4063_s10 }
 0x677   : > { %v3927_v60 = vpop.eup %3926 }
 0x678   : > { %v957_v61 = vadd.f32 1.0, %v3927_v60 }
 0x67a   : > { %3928 = vrcp.f32 %v957_v61 }
 0x684   : > { %v3929_v62 = vpop.eup %3928 }
 0x685   : > { %v961_v1 = vmul.f32 %v3929_v62, %v717_v50 }
 0x6e8   : > { %v964_v63 = vpop.permute.xlu0 %963 }
 0x6e9   : > { %v966_v0 = vmul.f32 %v3929_v62, %v964_v63 }
 0x6eb   : > { %968 = vrot.lane.b32.xlu1 %v966_v0, %s4063_s10 }
 0x75d   : > { %v969_v2 = vpop.permute.xlu1 %968 }
 0x75e   : > { %v971_v6 = vadd.f32 %v969_v2, %v961_v1 }
 0x760   : > { %3930 = vtanh.f32 %v971_v6 }
 0x76a   : > { %v3931_v7 = vpop.eup %3930 }
 0x76b   : > { %974 = vrot.lane.b32.xlu0 %v3931_v7, %s4063_s10 }
 0x7dd   : > { %v975_v9 = vpop.permute.xlu0 %974 }
 0x7de   : > { %v4255_v10 = vmul.f32 %v3929_v62, %v975_v9 }
 0x7e0   : > { %981 = vrot.lane.b32.xlu1 %v4255_v10, %s4064_s15 }
 0x852   : > { %v4259_v11 = vpop.permute.xlu1 %981 }
 0x853   : > { %3623 = vmatmul.mubr.msk.f32.vlgmr.msra.gmra.mrb[6].mxu1 %vm359_vm2, %v4259_v11 }
 0x854   : > { %3829 = vmatpush3.bf16.msra.mxu1 %v4148_v4  ;;  %3647 = vmatprep.mubr.msk.f32.mxu1 %vm4062_vm0, %v4061_v5 }
 0x855   : > { %3830 = vmatprep.subr.bf16.mxu1 %v4060_v3 }
 0x858   : > { %3832 = vmatpush3.bf16.msra.mxu1 %v4162_v8 }
 0x859   : > { %3839 = vmatprep.subr.bf16.mxu1 %v4060_v3 }
 0x926   : > { %v1203_v13 = vpop.f32.mrb[6].mxu1 }
 0x927   : > { %v1207_v14 = vadd.f32 %v1203_v13, %v4186_v12  ;;  %v3624_v15 = vpop.f32.mrb[7].mxu1 }
 0x929   : > { %3932 = vtanh.f32 %v1207_v14  ;;  %v3382_v17 = vmul.f32 -1.442695, %v1207_v14 }
 0x92b   : > { %3934 = vpow2.f32 %v3382_v17 }
 0x933   : > { %v3933_v16 = vpop.eup %3932 }
 0x934   : > { %1217 = vrot.lane.b32.xlu0 %v3933_v16, %s4063_s10 }
 0x935   : > { %v3935_v18 = vpop.eup %3934 }
 0x936   : > { %v1211_v19 = vadd.f32 1.0, %v3935_v18 }
 0x938   : > { %3936 = vrcp.f32 %v1211_v19 }
 0x942   : > { %v3937_v20 = vpop.eup %3936 }
 0x943   : > { %v1215_v23 = vmul.f32 %v3937_v20, %v971_v6 }
 0x9a6   : > { %v1218_v21 = vpop.permute.xlu0 %1217 }
 0x9a7   : > { %v1220_v22 = vmul.f32 %v3937_v20, %v1218_v21 }
 0x9a9   : > { %1222 = vrot.lane.b32.xlu1 %v1220_v22, %s4063_s10 }
 0xa1b   : > { %v1223_v24 = vpop.permute.xlu1 %1222 }
 0xa1c   : > { %v1225_v25 = vadd.f32 %v1223_v24, %v1215_v23 }
 0xa1e   : > { %3938 = vtanh.f32 %v1225_v25 }
 0xa28   : > { %v3939_v26 = vpop.eup %3938 }
 0xa29   : > { %1228 = vrot.lane.b32.xlu0 %v3939_v26, %s4063_s10 }
 0xa9b   : > { %v1229_v27 = vpop.permute.xlu0 %1228 }
 0xa9c   : > { %v4273_v28 = vmul.f32 %v3937_v20, %v1229_v27 }
 0xa9e   : > { %1235 = vrot.lane.b32.xlu1 %v4273_v28, %s4064_s15 }
 0xb10   : > { %v4277_v30 = vpop.permute.xlu1 %1235 }
 0xb11   : > { %3648 = vmatmul.mubr.msk.f32.vlgmr.msra.gmra.mrb[8].mxu1 %vm359_vm2, %v4277_v30 }
 0xb12   : > { %3841 = vmatpush3.bf16.msra.mxu1 %v4148_v4  ;;  %3672 = vmatprep.mubr.msk.f32.mxu1 %vm4062_vm0, %v4061_v5 }
 0xb13   : > { %3842 = vmatprep.subr.bf16.mxu1 %v4060_v3 }
 0xb16   : > { %3844 = vmatpush3.bf16.msra.mxu1 %v4162_v8 }
 0xb17   : > { %3851 = vmatprep.subr.bf16.mxu1 %v4060_v3 }
 0xbe4   : > { %v1457_v31 = vpop.f32.mrb[8].mxu1 }
 0xbe5   : > { %v1461_v33 = vadd.f32 %v1457_v31, %v4186_v12  ;;  %v3649_v34 = vpop.f32.mrb[9].mxu1 }
 0xbe7   : > { %3940 = vtanh.f32 %v1461_v33  ;;  %v3386_v36 = vmul.f32 -1.442695, %v1461_v33 }
 0xbe9   : > { %3942 = vpow2.f32 %v3386_v36 }
 0xbf1   : > { %v3941_v35 = vpop.eup %3940 }
 0xbf2   : > { %1471 = vrot.lane.b32.xlu0 %v3941_v35, %s4063_s10 }
 0xbf3   : > { %v3943_v37 = vpop.eup %3942 }
 0xbf4   : > { %v1465_v38 = vadd.f32 1.0, %v3943_v37  ;;  %v355_v37 = vld [vmem:[%s4591_s4 + $0x10] sm:$0xff] }
 0xbf6   : > { %3944 = vrcp.f32 %v1465_v38  ;;  %v356_v38 = vld [vmem:[%s4591_s4 + $0x18] sm:$0xff] }
 0xc00   : > { %v3945_v39 = vpop.eup %3944 }
 0xc01   : > { %v1469_v42 = vmul.f32 %v3945_v39, %v1225_v25 }
 0xc64   : > { %v1472_v40 = vpop.permute.xlu0 %1471 }
 0xc65   : > { %v1474_v41 = vmul.f32 %v3945_v39, %v1472_v40 }
 0xc67   : > { %1476 = vrot.lane.b32.xlu1 %v1474_v41, %s4063_s10 }
 0xcd9   : > { %v1477_v43 = vpop.permute.xlu1 %1476 }
 0xcda   : > { %v1479_v44 = vadd.f32 %v1477_v43, %v1469_v42 }
 0xcdc   : > { %3946 = vtanh.f32 %v1479_v44 }
 0xce6   : > { %v3947_v45 = vpop.eup %3946 }
 0xce7   : > { %1482 = vrot.lane.b32.xlu0 %v3947_v45, %s4063_s10 }
 0xd59   : > { %v1483_v46 = vpop.permute.xlu0 %1482 }
 0xd5a   : > { %v4291_v47 = vmul.f32 %v3945_v39, %v1483_v46  ;;  %v4342_v39 = vpack.c.bf16 %v356_v38, %v355_v37 }
 0xd5c   : > { %1488 = vrot.lane.b32.xlu1 %v4291_v47, %s4064_s15  ;;  %3790 = vmatpush3.bf16.msra.mxu0 %v4342_v39 }
 0xd5d   : > { %3797 = vmatprep.subr.bf16.mxu0 %v4060_v3 }
 0xdce   : > { %v4295_v48 = vpop.permute.xlu1 %1488 }
 0xdcf   : > { %3673 = vmatmul.mubr.msk.f32.vlgmr.msra.gmra.mrb[10].mxu1 %vm359_vm2, %v4295_v48 }
 0xdd0   : > { %3853 = vmatpush3.bf16.msra.mxu1 %v4148_v4  ;;  %3697 = vmatprep.mubr.msk.f32.mxu1 %vm4062_vm0, %v4061_v5 }
 0xdd1   : > { %3854 = vmatprep.subr.bf16.mxu1 %v4060_v3 }
 0xdd4   : > { %3856 = vmatpush3.bf16.msra.mxu1 %v4162_v8 }
 0xdd5   : > { %3863 = vmatprep.subr.bf16.mxu1 %v4060_v3 }
 0xea2   : > { %v1709_v49 = vpop.f32.mrb[10].mxu1 }
 0xea3   : > { %v1713_v50 = vadd.f32 %v1709_v49, %v4186_v12  ;;  %v3674_v51 = vpop.f32.mrb[11].mxu1  ;;  %v550_v49 = vld [vmem:[#allocation2 + $0x38] sm:$0xff] }
 0xea5   : > { %3948 = vtanh.f32 %v1713_v50  ;;  %v3390_v55 = vmul.f32 -1.442695, %v1713_v50 }
 0xea7   : > { %3950 = vpow2.f32 %v3390_v55  ;;  %v725_v55 = vld [vmem:[#allocation2 + $0x8] sm:$0xff] }
 0xeaf   : > { %v3949_v52 = vpop.eup %3948 }
 0xeb0   : > { %1723 = vrot.lane.b32.xlu0 %v3949_v52, %s4063_s10 }
 0xeb1   : > { %v3951_v56 = vpop.eup %3950 }
 0xeb2   : > { %v1717_v57 = vadd.f32 1.0, %v3951_v56 }
 0xeb4   : > { %3952 = vrcp.f32 %v1717_v57 }
 0xebe   : > { %v3953_v58 = vpop.eup %3952 }
 0xebf   : > { %v1721_v61 = vmul.f32 %v3953_v58, %v1479_v44 }
 0xf22   : > { %v1724_v59 = vpop.permute.xlu0 %1723 }
 0xf23   : > { %v1726_v60 = vmul.f32 %v3953_v58, %v1724_v59 }
 0xf25   : > { %1728 = vrot.lane.b32.xlu1 %v1726_v60, %s4063_s10 }
 0xf97   : > { %v1729_v62 = vpop.permute.xlu1 %1728 }
 0xf98   : > { %v1731_v63 = vadd.f32 %v1729_v62, %v1721_v61 }
 0xf9a   : > { %3954 = vtanh.f32 %v1731_v63 }
 0xfa4   : > { %v3955_v0 = vpop.eup %3954 }
 0xfa5   : > { %1734 = vrot.lane.b32.xlu0 %v3955_v0, %s4063_s10 }
0x1017   : > { %v1735_v1 = vpop.permute.xlu0 %1734 }
0x1018   : > { %v4309_v2 = vmul.f32 %v3953_v58, %v1735_v1  ;;  %v979_v1 = vld [vmem:[#allocation2 + $0x10] sm:$0xff] }
0x101a   : > { %1740 = vrot.lane.b32.xlu1 %v4309_v2, %s4064_s15 }
0x108c   : > { %v4313_v6 = vpop.permute.xlu1 %1740 }
0x108d   : > { %3698 = vmatmul.mubr.msk.f32.vlgmr.msra.gmra.mrb[12].mxu1 %vm359_vm2, %v4313_v6 }
0x108e   : > { %3865 = vmatpush3.bf16.msra.mxu1 %v4148_v4  ;;  %3722 = vmatprep.mubr.msk.f32.mxu1 %vm4062_vm0, %v4061_v5 }
0x108f   : > { %3866 = vmatprep.subr.bf16.mxu1 %v4060_v3 }
0x1092   : > { %3868 = vmatpush3.bf16.msra.mxu1 %v4162_v8 }
0x1093   : > { %3739 = vmatprep.subr.mxu1 %v4061_v5 }
0x1160   : > { %v1961_v7 = vpop.f32.mrb[12].mxu1 }
0x1161   : > { %v1965_v9 = vadd.f32 %v1961_v7, %v4186_v12  ;;  %v3699_v13 = vpop.f32.mrb[13].mxu1 }
0x1163   : > { %3956 = vtanh.f32 %v1965_v9  ;;  %v3394_v15 = vmul.f32 -1.442695, %v1965_v9  ;;  %v1058_v9 = vld [vmem:[#allocation2 + $0x28] sm:$0xff] }
0x1165   : > { %3958 = vpow2.f32 %v3394_v15 }
0x116d   : > { %v3957_v14 = vpop.eup %3956 }
0x116e   : > { %1975 = vrot.lane.b32.xlu0 %v3957_v14, %s4063_s10 }
0x116f   : > { %v3959_v4 = vpop.eup %3958 }
0x1170   : > { %v1969_v16 = vadd.f32 1.0, %v3959_v4  ;;  %v1233_v4 = vld [vmem:[#allocation2 + $0x18] sm:$0xff] }
0x1172   : > { %3960 = vrcp.f32 %v1969_v16 }
0x117c   : > { %v3961_v17 = vpop.eup %3960 }
0x117d   : > { %v1973_v8 = vmul.f32 %v3961_v17, %v1731_v63 }
0x11e0   : > { %v1976_v18 = vpop.permute.xlu0 %1975 }
0x11e1   : > { %v1978_v19 = vmul.f32 %v3961_v17, %v1976_v18 }
0x11e3   : > { %1980 = vrot.lane.b32.xlu1 %v1978_v19, %s4063_s10  ;;  %v1312_v19 = vld [vmem:[#allocation2 + $0x20] sm:$0xff] }
0x1255   : > { %v1981_v20 = vpop.permute.xlu1 %1980 }
0x1256   : > { %v1983_v21 = vadd.f32 %v1981_v20, %v1973_v8 }
0x1258   : > { %3962 = vtanh.f32 %v1983_v21 }
0x1262   : > { %v3963_v22 = vpop.eup %3962 }
0x1263   : > { %1986 = vrot.lane.b32.xlu0 %v3963_v22, %s4063_s10 }
0x12d5   : > { %v1987_v23 = vpop.permute.xlu0 %1986 }
0x12d6   : > { %v1989_v24 = vmul.f32 %v3961_v17, %v1987_v23 }
0x12d8   : > { %1992 = vrot.lane.b32.xlu1 %v1989_v24, %s4064_s15 }
0x134a   : > { %v4328_v25 = vpop.permute.xlu1 %1992 }
0x134b   : > { %3723 = vmatmul.mubr.msk.f32.vlgmr.msra.gmra.mrb[14].mxu1 %vm359_vm2, %v4328_v25 }
0x134c   : > { %3741 = vmatprep.mubr.msk.f32.mxu1 %vm4062_vm0, %v4061_v5 }
0x141e   : > { %v2213_v26 = vpop.f32.mrb[14].mxu1 }
0x141f   : > { %v2217_v27 = vadd.f32 %v2213_v26, %v4186_v12  ;;  %v3724_v31 = vpop.f32.mrb[15].mxu1 }
0x1421   : > { %3964 = vtanh.f32 %v2217_v27  ;;  %v3398_v34 = vmul.f32 -1.442695, %v2217_v27 }
0x1423   : > { %3966 = vpow2.f32 %v3398_v34 }
0x142b   : > { %v3965_v33 = vpop.eup %3964 }
0x142c   : > { %2227 = vrot.lane.b32.xlu0 %v3965_v33, %s4063_s10 }
0x142d   : > { %v3967_v35 = vpop.eup %3966 }
0x142e   : > { %v2221_v36 = vadd.f32 1.0, %v3967_v35 }
0x1430   : > { %3968 = vrcp.f32 %v2221_v36 }
0x143a   : > { %v3969_v12 = vpop.eup %3968 }
0x143b   : > { %v2225_v42 = vmul.f32 %v3969_v12, %v1983_v21 }
0x149e   : > { %v2228_v40 = vpop.permute.xlu0 %2227 }
0x149f   : > { %v2230_v41 = vmul.f32 %v3969_v12, %v2228_v40 }
0x14a1   : > { %2232 = vrot.lane.b32.xlu1 %v2230_v41, %s4063_s10 }
0x14a5   : > { %551 = vrot.lane.b32.xlu1 %v4218_v32, %s4065_s20 }
0x14a9   : > { %1059 = vrot.lane.b32.xlu1 %v4255_v10, %s4065_s20 }
0x14ad   : > { %1565 = vrot.lane.b32.xlu1 %v4291_v47, %s4065_s20 }
0x14b1   : > { %2069 = vrot.lane.b32.xlu1 %v1989_v24, %s4065_s20 }
0x1513   : > { %v2233_v43 = vpop.permute.xlu1 %2232 }
0x1514   : > { %v2235_v44 = vadd.f32 %v2233_v43, %v2225_v42 }
0x1516   : > { %3970 = vtanh.f32 %v2235_v44 }
0x1517   : > { %v552_v45 = vpop.permute.xlu1 %551 }
0x1518   : > { %3562 = vmatmul.mubr.msk.f32.vlgmr.msra.gmra.mrb[4].mxu0 %vm474_vm3, %v552_v45 }
0x1519   : > { %3799 = vmatpush3.bf16.msra.mxu0 %v4197_v29  ;;  %3579 = vmatprep.mubr.msk.f32.mxu0 %vm4062_vm0, %v4061_v5 }
0x151a   : > { %3800 = vmatprep.subr.bf16.mxu0 %v4060_v3 }
0x151b   : > { %v1060_v46 = vpop.permute.xlu1 %1059 }
0x151c   : > { %3580 = vmatmul.mubr.msk.f32.vlgmr.msra.gmra.mrb[6].mxu0 %vm474_vm3, %v4241_v54  ;;  %v4375_v54 = vld [vmem:[%s4592_s5] sm:$0xff] }
0x151d   : > { %3802 = vmatpush3.bf16.msra.mxu0 %v4342_v39  ;;  %3586 = vmatprep.mubr.msk.f32.mxu0 %vm4062_vm0, %v4061_v5 }
0x151e   : > { %3809 = vmatprep.subr.bf16.mxu0 %v4060_v3  ;;  %3740 = vmatpush3.msra.mxu1 %v4375_v54 }
0x151f   : > { %3742 = vmatmul.mubr.f32.vlgmr.msra.gmra.mrb[16].mxu1 %v4061_v5  ;;  %3749 = vmatprep.subr.mxu1 %v4061_v5 }
0x1520   : > { %v3971_v32 = vpop.eup %3970  ;;  %3750 = vmatpush3.msra.mxu1 %v4375_v54  ;;  %3751 = vmatprep.mubr.msk.f32.mxu1 %vm4062_vm0, %v4061_v5 }
0x1521   : > { %2238 = vrot.lane.b32.xlu0 %v3971_v32, %s4063_s10  ;;  %3759 = vmatprep.subr.mxu1 %v4061_v5  ;;  %s4068_s10 = smov 112  }
0x1525   : > { %805 = vrot.lane.b32.xlu0 %v4237_v53, %s4065_s20 }
0x1529   : > { %1313 = vrot.lane.b32.xlu0 %v4273_v28, %s4065_s20 }
0x152d   : > { %1817 = vrot.lane.b32.xlu0 %v4309_v2, %s4065_s20 }
0x1593   : > { %v2239_v53 = vpop.permute.xlu0 %2238 }
0x1594   : > { %v2241_v10 = vmul.f32 %v3969_v12, %v2239_v53 }
0x1596   : > { %2321 = vrot.lane.b32.xlu1 %v2241_v10, %s4065_s20  ;;  %2244 = vrot.lane.b32.xlu0 %v2241_v10, %s4064_s15 }
0x1597   : > { %v806_v28 = vpop.permute.xlu0 %805 }
0x1598   : > { %3587 = vmatmul.mubr.msk.f32.vlgmr.msra.gmra.mrb[8].mxu0 %vm474_vm3, %v806_v28 }
0x1599   : > { %3811 = vmatpush3.bf16.msra.mxu0 %v4197_v29  ;;  %3604 = vmatprep.mubr.msk.f32.mxu0 %vm4062_vm0, %v4061_v5 }
0x159a   : > { %3812 = vmatprep.subr.bf16.mxu0 %v4060_v3 }
0x159c   : > { %3605 = vmatmul.mubr.msk.f32.vlgmr.msra.gmra.mrb[10].mxu0 %vm474_vm3, %v4259_v11  ;;  %v1314_v11 = vpop.permute.xlu0 %1313 }
0x159d   : > { %3814 = vmatpush3.bf16.msra.mxu0 %v4342_v39  ;;  %3611 = vmatprep.mubr.msk.f32.mxu0 %vm4062_vm0, %v4061_v5 }
0x159e   : > { %3821 = vmatprep.subr.bf16.mxu0 %v4060_v3 }
0x15a0   : > { %3612 = vmatmul.mubr.msk.f32.vlgmr.msra.gmra.mrb[12].mxu0 %vm474_vm3, %v1060_v46  ;;  %v1818_v47 = vpop.permute.xlu0 %1817 }
0x15a1   : > { %3823 = vmatpush3.bf16.msra.mxu0 %v4197_v29  ;;  %3629 = vmatprep.mubr.msk.f32.mxu0 %vm4062_vm0, %v4061_v5 }
0x15a2   : > { %3824 = vmatprep.subr.bf16.mxu0 %v4060_v3 }
0x15a4   : > { %3630 = vmatmul.mubr.msk.f32.vlgmr.msra.gmra.mrb[14].mxu0 %vm474_vm3, %v4277_v30  ;;  %v1566_v30 = vpop.permute.xlu1 %1565 }
0x15a5   : > { %3826 = vmatpush3.bf16.msra.mxu0 %v4342_v39  ;;  %3636 = vmatprep.mubr.msk.f32.mxu0 %vm4062_vm0, %v4061_v5 }
0x15a6   : > { %3833 = vmatprep.subr.bf16.mxu0 %v4060_v3 }
0x15a8   : > { %3637 = vmatmul.mubr.msk.f32.vlgmr.msra.gmra.mrb[16].mxu0 %vm474_vm3, %v1314_v11 }
0x15a9   : > { %3835 = vmatpush3.bf16.msra.mxu0 %v4197_v29  ;;  %3654 = vmatprep.mubr.msk.f32.mxu0 %vm4062_vm0, %v4061_v5 }
0x15aa   : > { %3836 = vmatprep.subr.bf16.mxu0 %v4060_v3 }
0x15ac   : > { %3655 = vmatmul.mubr.msk.f32.vlgmr.msra.gmra.mrb[18].mxu0 %vm474_vm3, %v4295_v48  ;;  %v2070_v48 = vpop.permute.xlu1 %2069 }
0x15ad   : > { %3838 = vmatpush3.bf16.msra.mxu0 %v4342_v39  ;;  %3661 = vmatprep.mubr.msk.f32.mxu0 %vm4062_vm0, %v4061_v5 }
0x15ae   : > { %3845 = vmatprep.subr.bf16.mxu0 %v4060_v3 }
0x15b0   : > { %3662 = vmatmul.mubr.msk.f32.vlgmr.msra.gmra.mrb[20].mxu0 %vm474_vm3, %v1566_v30 }
0x15b1   : > { %3847 = vmatpush3.bf16.msra.mxu0 %v4197_v29  ;;  %3679 = vmatprep.mubr.msk.f32.mxu0 %vm4062_vm0, %v4061_v5 }
0x15b2   : > { %3848 = vmatprep.subr.bf16.mxu0 %v4060_v3 }
0x15b4   : > { %3680 = vmatmul.mubr.msk.f32.vlgmr.msra.gmra.mrb[22].mxu0 %vm474_vm3, %v4313_v6 }
0x15b5   : > { %3850 = vmatpush3.bf16.msra.mxu0 %v4342_v39  ;;  %3686 = vmatprep.mubr.msk.f32.mxu0 %vm4062_vm0, %v4061_v5 }
0x15b6   : > { %3857 = vmatprep.subr.bf16.mxu0 %v4060_v3 }
0x15b8   : > { %3687 = vmatmul.mubr.msk.f32.vlgmr.msra.gmra.mrb[24].mxu0 %vm474_vm3, %v1818_v47  ;;  %v2320_v47 = vld [vmem:[#allocation2] sm:$0xff] }
0x15b9   : > { %3859 = vmatpush3.bf16.msra.mxu0 %v4197_v29  ;;  %3704 = vmatprep.mubr.msk.f32.mxu0 %vm4062_vm0, %v4061_v5 }
0x15ba   : > { %3860 = vmatprep.subr.bf16.mxu0 %v4060_v3 }
0x15bc   : > { %3705 = vmatmul.mubr.msk.f32.vlgmr.msra.gmra.mrb[26].mxu0 %vm474_vm3, %v4328_v25 }
0x15bd   : > { %3862 = vmatpush3.bf16.msra.mxu0 %v4342_v39  ;;  %3711 = vmatprep.mubr.msk.f32.mxu0 %vm4062_vm0, %v4061_v5 }
0x15be   : > { %3869 = vmatprep.subr.bf16.mxu0 %v4060_v3 }
0x15c0   : > { %3712 = vmatmul.mubr.msk.f32.vlgmr.msra.gmra.mrb[28].mxu0 %vm474_vm3, %v2070_v48 }
0x15c1   : > { %3871 = vmatpush3.bf16.msra.mxu0 %v4197_v29  ;;  %3729 = vmatprep.mubr.msk.f32.mxu0 %vm4062_vm0, %v4061_v5  ;;  %v804_v29 = vld [vmem:[#allocation2 + $0x30] sm:$0xff] }
0x15c2   : > { %3872 = vmatprep.subr.bf16.mxu0 %v4060_v3 }
0x15eb   : > { %v621_v50 = vpop.f32.mrb[4].mxu0 }
0x15ec   : > { %v625_v51 = vadd.f32 %v621_v50, %v550_v49  ;;  %v3563_v52 = vpop.f32.mrb[5].mxu0 }
0x15ee   : > { %626 = vst.msk [vmem:[#allocation2 + $0x38] sm:$0xff] %vm359_vm2, %v625_v51  ;;  %v4476_v51 = vld [vmem:[%s4593_s6] ss:$0 sm:$0xff] }
0x15ef   : > { %v797_v56 = vpop.f32.mrb[6].mxu0 }
0x15f0   : > { %v801_v57 = vadd.f32 %v797_v56, %v725_v55  ;;  %v3581_v58 = vpop.f32.mrb[7].mxu0 }
0x15f2   : > { %802 = vst.msk [vmem:[#allocation2 + $0x8] sm:$0xff] %vm359_vm2, %v801_v57  ;;  %v4458_v61 = vpop.f32.mrb[16].mxu1 }
0x15f3   : > { %v3743_v0 = vpop.f32.mrb[17].mxu1 }
0x15f5   : > { %v2242_v28 = vld [vmem:[#allocation2 + $0x38] sm:$0xff] }
0x15f9   : > { %v2068_v45 = vld [vmem:[#allocation2 + $0x8] sm:$0xff] }
0x1608   : > { %v2245_v59 = vpop.permute.xlu0 %2244  ;;  %v2322_v3 = vpop.permute.xlu1 %2321 }
0x1609   : > { %3730 = vmatmul.mubr.msk.f32.vlgmr.msra.gmra.mrb[30].mxu0 %vm474_vm3, %v2245_v59 }
0x160a   : > { %3874 = vmatpush3.bf16.msra.mxu0 %v4342_v39  ;;  %3736 = vmatprep.mubr.msk.f32.mxu0 %vm4062_vm0, %v4061_v5 }
0x160b   : > { %3744 = vmatprep.subr.mxu0 %v4061_v5 }
0x160d   : > { %3737 = vmatmul.mubr.msk.f32.vlgmr.msra.gmra.mrb[32].mxu0 %vm474_vm3, %v2322_v3 }
0x160e   : > { %3745 = vmatpush3.msra.mxu0 %v4375_v54  ;;  %3746 = vmatprep.mubr.msk.f32.mxu0 %vm4062_vm0, %v4061_v5 }
0x160f   : > { %3754 = vmatprep.subr.mxu0 %v4061_v5 }
0x166b   : > { %v875_v60 = vpop.f32.mrb[8].mxu0 }
0x166c   : > { %v879_v62 = vadd.f32 %v875_v60, %v804_v29  ;;  %v3588_v63 = vpop.f32.mrb[9].mxu0 }
0x166e   : > { %880 = vst.msk [vmem:[#allocation2 + $0x30] sm:$0xff] %vm359_vm2, %v879_v62 }
0x166f   : > { %v1051_v2 = vpop.f32.mrb[10].mxu0 }
0x1670   : > { %v1055_v6 = vadd.f32 %v1051_v2, %v979_v1  ;;  %v3606_v7 = vpop.f32.mrb[11].mxu0 }
0x1672   : > { %1056 = vst.msk [vmem:[#allocation2 + $0x10] sm:$0xff] %vm359_vm2, %v1055_v6 }
0x1673   : > { %v1129_v13 = vpop.f32.mrb[12].mxu0 }
0x1674   : > { %v1133_v14 = vadd.f32 %v1129_v13, %v1058_v9  ;;  %v3613_v15 = vpop.f32.mrb[13].mxu0 }
0x1675   : > { %v1990_v41 = vld [vmem:[#allocation2 + $0x30] sm:$0xff] }
0x1676   : > { %1134 = vst.msk [vmem:[#allocation2 + $0x28] sm:$0xff] %vm359_vm2, %v1133_v14 }
0x1677   : > { %v1305_v16 = vpop.f32.mrb[14].mxu0 }
0x1678   : > { %v1309_v17 = vadd.f32 %v1305_v16, %v1233_v4  ;;  %v3631_v18 = vpop.f32.mrb[15].mxu0 }
0x1679   : > { %v1816_v38 = vld [vmem:[#allocation2 + $0x10] sm:$0xff] }
0x167a   : > { %1310 = vst.msk [vmem:[#allocation2 + $0x18] sm:$0xff] %vm359_vm2, %v1309_v17 }
0x167b   : > { %v1383_v8 = vpop.f32.mrb[16].mxu0 }
0x167c   : > { %v1387_v20 = vadd.f32 %v1383_v8, %v1312_v19  ;;  %v3638_v21 = vpop.f32.mrb[17].mxu0 }
0x167d   : > { %v1738_v34 = vld [vmem:[#allocation2 + $0x28] sm:$0xff] }
0x167e   : > { %1388 = vst.msk [vmem:[#allocation2 + $0x20] sm:$0xff] %vm359_vm2, %v1387_v20 }
0x167f   : > { %v1558_v22 = vpop.f32.mrb[18].mxu0 }
0x1680   : > { %v3656_v23 = vpop.f32.mrb[19].mxu0 }
0x1681   : > { %v1564_v24 = vld [vmem:[#allocation2 + $0x18] sm:$0xff] }
0x1683   : > { %v1635_v25 = vpop.f32.mrb[20].mxu0 }
0x1684   : > { %v1639_v26 = vadd.f32 %v1635_v25, %v1564_v24  ;;  %v3663_v27 = vpop.f32.mrb[21].mxu0 }
0x1685   : > { %v1486_v31 = vld [vmem:[#allocation2 + $0x20] sm:$0xff] }
0x1686   : > { %v1562_v33 = vadd.f32 %v1558_v22, %v1486_v31  ;;  %1640 = vst.msk [vmem:[#allocation2 + $0x18] sm:$0xff] %vm359_vm2, %v1639_v26 }
0x1687   : > { %v1810_v35 = vpop.f32.mrb[22].mxu0 }
0x1688   : > { %1563 = vst.msk [vmem:[#allocation2 + $0x20] sm:$0xff] %vm359_vm2, %v1562_v33  ;;  %v1814_v36 = vadd.f32 %v1810_v35, %v1738_v34  ;;  %v3681_v37 = vpop.f32.mrb[23].mxu0 }
0x168a   : > { %1815 = vst.msk [vmem:[#allocation2 + $0x28] sm:$0xff] %vm359_vm2, %v1814_v36 }
0x168b   : > { %v1887_v39 = vpop.f32.mrb[24].mxu0 }
0x168c   : > { %v1891_v12 = vadd.f32 %v1887_v39, %v1816_v38  ;;  %v3688_v40 = vpop.f32.mrb[25].mxu0 }
0x168e   : > { %1892 = vst.msk [vmem:[#allocation2 + $0x10] sm:$0xff] %vm359_vm2, %v1891_v12 }
0x168f   : > { %v2062_v42 = vpop.f32.mrb[26].mxu0 }
0x1690   : > { %v2066_v43 = vadd.f32 %v2062_v42, %v1990_v41  ;;  %v3706_v44 = vpop.f32.mrb[27].mxu0 }
0x1692   : > { %2067 = vst.msk [vmem:[#allocation2 + $0x30] sm:$0xff] %vm359_vm2, %v2066_v43 }
0x1693   : > { %v2139_v32 = vpop.f32.mrb[28].mxu0 }
0x1694   : > { %v2143_v53 = vadd.f32 %v2139_v32, %v2068_v45  ;;  %v3713_v10 = vpop.f32.mrb[29].mxu0 }
0x1695   : > { %v2612_v33 = vld [vmem:[#allocation2 + $0x10] sm:$0xff] }
0x1696   : > { %2144 = vst.msk [vmem:[#allocation2 + $0x8] sm:$0xff] %vm359_vm2, %v2143_v53  ;;  %v2613_v34 = vadd.f32 %v4476_v51, %v2612_v33 }
0x169d   : > { %v2507_v9 = vld [vmem:[#allocation2 + $0x8] sm:$0xff] }
0x169e   : > { %v2508_v13 = vadd.f32 %v4476_v51, %v2507_v9 }
0x16dc   : > { %v2314_v46 = vpop.f32.mrb[30].mxu0 }
0x16dd   : > { %v2318_v11 = vadd.f32 %v2314_v46, %v2242_v28  ;;  %v3731_v30 = vpop.f32.mrb[31].mxu0 }
0x16df   : > { %2319 = vst.msk [vmem:[#allocation2 + $0x38] sm:$0xff] %vm359_vm2, %v2318_v11  ;;  %v2717_v11 = vld [vmem:[#allocation2 + $0x18] sm:$0xff] }
0x16e0   : > { %v2391_v48 = vpop.f32.mrb[32].mxu0  ;;  %v2718_v30 = vadd.f32 %v4476_v51, %v2717_v11 }
0x16e1   : > { %v2395_v49 = vadd.f32 %v2391_v48, %v2320_v47  ;;  %v3738_v50 = vpop.f32.mrb[33].mxu0 }
0x16e3   : > { %2396 = vst.msk [vmem:[#allocation2] sm:$0xff] %vm359_vm2, %v2395_v49 }
0x16ea   : > { %v2397_v52 = vld [vmem:[#allocation2] sm:$0xff] }
0x16eb   : > { %v2404_v55 = vadd.f32 %v4476_v51, %v2397_v52 }
0x16ed   : > { %v2477_v56 = vadd.f32 %v4458_v61, %v2404_v55 }
0x16ef   : > { %3972 = vtanh.f32 %v2477_v56  ;;  %v3402_v58 = vmul.f32 -1.442695, %v2477_v56 }
0x16f1   : > { %3974 = vpow2.f32 %v3402_v58 }
0x16f9   : > { %v3973_v57 = vpop.eup %3972 }
0x16fa   : > { %2487 = vrot.lane.b32.xlu0 %v3973_v57, %s4066_s29 }
0x16fb   : > { %v3975_v59 = vpop.eup %3974 }
0x16fc   : > { %v2481_v3 = vadd.f32 1.0, %v3975_v59 }
0x16fe   : > { %3976 = vrcp.f32 %v2481_v3 }
0x1708   : > { %v3977_v29 = vpop.eup %3976 }
0x1709   : > { %v2485_v63 = vmul.f32 0.0, %v3977_v29 }
0x176c   : > { %v2488_v60 = vpop.permute.xlu0 %2487 }
0x176d   : > { %v2490_v62 = vmul.f32 %v3977_v29, %v2488_v60 }
0x176f   : > { %2492 = vrot.lane.b32.xlu1 %v2490_v62, %s4067_s30 }
0x17e1   : > { %v2493_v0 = vpop.permute.xlu1 %2492 }
0x17e2   : > { %v2495_v61 = vadd.f32 %v2493_v0, %v2485_v63 }
0x17e4   : > { %3978 = vtanh.f32 %v2495_v61 }
0x17ee   : > { %v3979_v1 = vpop.eup %3978 }
0x17ef   : > { %2498 = vrot.lane.b32.xlu0 %v3979_v1, %s4067_s30  ;;  %v2822_v1 = vld [vmem:[#allocation2 + $0x20] sm:$0xff] }
0x1861   : > { %v2499_v2 = vpop.permute.xlu0 %2498 }
0x1862   : > { %v2501_v6 = vmul.f32 %v3977_v29, %v2499_v2  ;;  %v2823_v2 = vadd.f32 %v4476_v51, %v2822_v1 }
0x1864   : > { %2503 = vrot.lane.b32.xlu1 %v2501_v6, %s4068_s10 }
0x18d6   : > { %v2504_v7 = vpop.permute.xlu1 %2503 }
0x18d7   : > { %2506 = vst.msk [vmem:[%s4485_s13] sm:$0xff] %vm279_vm1, %v2504_v7  ;;  %3747 = vmatmul.mubr.msk.f32.vlgmr.msra.gmra.mrb[34].mxu0 %vm279_vm1, %v2504_v7 }
0x18d8   : > { %3755 = vmatpush3.msra.mxu0 %v4375_v54  ;;  %3756 = vmatprep.mubr.msk.f32.mxu0 %vm4062_vm0, %v4061_v5 }
0x18d9   : > { %3764 = vmatprep.subr.mxu0 %v4061_v5 }
0x19aa   : > { %v2577_v14 = vpop.f32.mrb[34].mxu0 }
0x19ab   : > { %v2581_v15 = vadd.f32 %v2577_v14, %v2508_v13  ;;  %v3748_v4 = vpop.f32.mrb[35].mxu0 }
0x19ad   : > { %3980 = vtanh.f32 %v2581_v15  ;;  %v3404_v17 = vmul.f32 -1.442695, %v2581_v15 }
0x19af   : > { %3982 = vpow2.f32 %v3404_v17 }
0x19b7   : > { %v3981_v16 = vpop.eup %3980 }
0x19b8   : > { %2591 = vrot.lane.b32.xlu0 %v3981_v16, %s4066_s29 }
0x19b9   : > { %v3983_v18 = vpop.eup %3982 }
0x19ba   : > { %v2585_v19 = vadd.f32 1.0, %v3983_v18 }
0x19bc   : > { %3984 = vrcp.f32 %v2585_v19 }
0x19c6   : > { %v3985_v8 = vpop.eup %3984 }
0x19c7   : > { %v2589_v22 = vmul.f32 %v3985_v8, %v2495_v61 }
0x1a2a   : > { %v2592_v20 = vpop.permute.xlu0 %2591 }
0x1a2b   : > { %v2594_v21 = vmul.f32 %v3985_v8, %v2592_v20 }
0x1a2d   : > { %2596 = vrot.lane.b32.xlu1 %v2594_v21, %s4067_s30 }
0x1a9f   : > { %v2597_v23 = vpop.permute.xlu1 %2596 }
0x1aa0   : > { %v2599_v24 = vadd.f32 %v2597_v23, %v2589_v22 }
0x1aa2   : > { %3986 = vtanh.f32 %v2599_v24 }
0x1aac   : > { %v3987_v25 = vpop.eup %3986 }
0x1aad   : > { %2602 = vrot.lane.b32.xlu0 %v3987_v25, %s4067_s30  ;;  %v2927_v25 = vld [vmem:[#allocation2 + $0x28] sm:$0xff] }
0x1b1f   : > { %v2603_v26 = vpop.permute.xlu0 %2602 }
0x1b20   : > { %v2605_v27 = vmul.f32 %v3985_v8, %v2603_v26  ;;  %v2928_v26 = vadd.f32 %v4476_v51, %v2927_v25 }
0x1b22   : > { %2607 = vrot.lane.b32.xlu1 %v2605_v27, %s4068_s10 }
0x1b94   : > { %v2608_v31 = vpop.permute.xlu1 %2607 }
0x1b95   : > { %3405 = vst.msk [vmem:[%s4485_s13 + $0x8] sm:$0xff] %vm279_vm1, %v2608_v31  ;;  %3752 = vmatmul.mubr.msk.f32.vlgmr.msra.gmra.mrb[18].mxu1 %vm279_vm1, %v2608_v31 }
0x1b96   : > { %3760 = vmatpush3.msra.mxu1 %v4375_v54  ;;  %3761 = vmatprep.mubr.msk.f32.mxu1 %vm4062_vm0, %v4061_v5 }
0x1b97   : > { %3769 = vmatprep.subr.mxu1 %v4061_v5 }
0x1c68   : > { %v2682_v35 = vpop.f32.mrb[18].mxu1 }
0x1c69   : > { %v2686_v36 = vadd.f32 %v2682_v35, %v2613_v34  ;;  %v3753_v37 = vpop.f32.mrb[19].mxu1 }
0x1c6b   : > { %3988 = vtanh.f32 %v2686_v36  ;;  %v3407_v39 = vmul.f32 -1.442695, %v2686_v36 }
0x1c6d   : > { %3990 = vpow2.f32 %v3407_v39 }
0x1c75   : > { %v3989_v38 = vpop.eup %3988 }
0x1c76   : > { %2696 = vrot.lane.b32.xlu0 %v3989_v38, %s4066_s29 }
0x1c77   : > { %v3991_v12 = vpop.eup %3990 }
0x1c78   : > { %v2690_v40 = vadd.f32 1.0, %v3991_v12 }
0x1c7a   : > { %3992 = vrcp.f32 %v2690_v40 }
0x1c84   : > { %v3993_v41 = vpop.eup %3992 }
0x1c85   : > { %v2694_v44 = vmul.f32 %v3993_v41, %v2599_v24 }
0x1ce8   : > { %v2697_v42 = vpop.permute.xlu0 %2696 }
0x1ce9   : > { %v2699_v43 = vmul.f32 %v3993_v41, %v2697_v42 }
0x1ceb   : > { %2701 = vrot.lane.b32.xlu1 %v2699_v43, %s4067_s30 }
0x1d5d   : > { %v2702_v45 = vpop.permute.xlu1 %2701 }
0x1d5e   : > { %v2704_v32 = vadd.f32 %v2702_v45, %v2694_v44  ;;  %v3032_v45 = vld [vmem:[#allocation2 + $0x30] sm:$0xff] }
0x1d60   : > { %3994 = vtanh.f32 %v2704_v32 }
0x1d6a   : > { %v3995_v53 = vpop.eup %3994 }
0x1d6b   : > { %2707 = vrot.lane.b32.xlu0 %v3995_v53, %s4067_s30 }
0x1ddd   : > { %v2708_v10 = vpop.permute.xlu0 %2707 }
0x1dde   : > { %v2710_v28 = vmul.f32 %v3993_v41, %v2708_v10 }
0x1de0   : > { %2712 = vrot.lane.b32.xlu1 %v2710_v28, %s4068_s10 }
0x1e52   : > { %v2713_v46 = vpop.permute.xlu1 %2712 }
0x1e53   : > { %3408 = vst.msk [vmem:[%s4485_s13 + $0x10] sm:$0xff] %vm279_vm1, %v2713_v46  ;;  %3757 = vmatmul.mubr.msk.f32.vlgmr.msra.gmra.mrb[36].mxu0 %vm279_vm1, %v2713_v46 }
0x1e54   : > { %3765 = vmatpush3.msra.mxu0 %v4375_v54  ;;  %3766 = vmatprep.mubr.msk.f32.mxu0 %vm4062_vm0, %v4061_v5 }
0x1e55   : > { %3774 = vmatprep.subr.mxu0 %v4061_v5 }
0x1f26   : > { %v2787_v47 = vpop.f32.mrb[36].mxu0 }
0x1f27   : > { %v2791_v48 = vadd.f32 %v2787_v47, %v2718_v30  ;;  %v3758_v49 = vpop.f32.mrb[37].mxu0 }
0x1f29   : > { %3996 = vtanh.f32 %v2791_v48  ;;  %v3410_v52 = vmul.f32 -1.442695, %v2791_v48 }
0x1f2b   : > { %3998 = vpow2.f32 %v3410_v52 }
0x1f33   : > { %v3997_v50 = vpop.eup %3996 }
0x1f34   : > { %2801 = vrot.lane.b32.xlu0 %v3997_v50, %s4066_s29 }
0x1f35   : > { %v3999_v55 = vpop.eup %3998 }
0x1f36   : > { %v2795_v56 = vadd.f32 1.0, %v3999_v55 }
0x1f38   : > { %4000 = vrcp.f32 %v2795_v56 }
0x1f42   : > { %v4001_v57 = vpop.eup %4000 }
0x1f43   : > { %v2799_v3 = vmul.f32 %v4001_v57, %v2704_v32  ;;  %v3033_v32 = vadd.f32 %v4476_v51, %v3032_v45 }
0x1fa6   : > { %v2802_v58 = vpop.permute.xlu0 %2801 }
0x1fa7   : > { %v2804_v59 = vmul.f32 %v4001_v57, %v2802_v58 }
0x1fa9   : > { %2806 = vrot.lane.b32.xlu1 %v2804_v59, %s4067_s30 }
0x201b   : > { %v2807_v29 = vpop.permute.xlu1 %2806 }
0x201c   : > { %v2809_v60 = vadd.f32 %v2807_v29, %v2799_v3  ;;  %v3137_v29 = vld [vmem:[#allocation2 + $0x38] sm:$0xff] }
0x201e   : > { %4002 = vtanh.f32 %v2809_v60 }
0x2028   : > { %v4003_v62 = vpop.eup %4002 }
0x2029   : > { %2812 = vrot.lane.b32.xlu0 %v4003_v62, %s4067_s30 }
0x209b   : > { %v2813_v63 = vpop.permute.xlu0 %2812 }
0x209c   : > { %v2815_v0 = vmul.f32 %v4001_v57, %v2813_v63 }
0x209e   : > { %2817 = vrot.lane.b32.xlu1 %v2815_v0, %s4068_s10 }
0x2110   : > { %v2818_v61 = vpop.permute.xlu1 %2817 }
0x2111   : > { %3411 = vst.msk [vmem:[%s4485_s13 + $0x18] sm:$0xff] %vm279_vm1, %v2818_v61  ;;  %3762 = vmatmul.mubr.msk.f32.vlgmr.msra.gmra.mrb[20].mxu1 %vm279_vm1, %v2818_v61 }
0x2112   : > { %3770 = vmatpush3.msra.mxu1 %v4375_v54  ;;  %3771 = vmatprep.mubr.msk.f32.mxu1 %vm4062_vm0, %v4061_v5 }
0x21e4   : > { %v2892_v6 = vpop.f32.mrb[20].mxu1 }
0x21e5   : > { %v2896_v7 = vadd.f32 %v2892_v6, %v2823_v2  ;;  %v3763_v9 = vpop.f32.mrb[21].mxu1 }
0x21e7   : > { %4004 = vtanh.f32 %v2896_v7  ;;  %v3413_v14 = vmul.f32 -1.442695, %v2896_v7 }
0x21e9   : > { %4006 = vpow2.f32 %v3413_v14 }
0x21f1   : > { %v4005_v13 = vpop.eup %4004 }
0x21f2   : > { %2906 = vrot.lane.b32.xlu0 %v4005_v13, %s4066_s29 }
0x21f3   : > { %v4007_v15 = vpop.eup %4006 }
0x21f4   : > { %v2900_v4 = vadd.f32 1.0, %v4007_v15 }
0x21f6   : > { %4008 = vrcp.f32 %v2900_v4 }
0x2200   : > { %v4009_v16 = vpop.eup %4008 }
0x2201   : > { %v2904_v19 = vmul.f32 %v4009_v16, %v2809_v60  ;;  %v3138_v60 = vadd.f32 %v4476_v51, %v3137_v29 }
0x2264   : > { %v2907_v17 = vpop.permute.xlu0 %2906 }
0x2265   : > { %v2909_v18 = vmul.f32 %v4009_v16, %v2907_v17 }
0x2267   : > { %2911 = vrot.lane.b32.xlu1 %v2909_v18, %s4067_s30 }
0x22d9   : > { %v2912_v8 = vpop.permute.xlu1 %2911 }
0x22da   : > { %v2914_v20 = vadd.f32 %v2912_v8, %v2904_v19  ;;  %v3292_v19 = vld [vmem:[%s4485_s13] sm:$0xff] (%p4134_p4)  ;;  %v3294_v8 = vld [vmem:[%s4485_s13 + $0x8] sm:$0xff] (%p4134_p4) }
0x22db   : > { %3293 = vst [vmem:[%s3250_s16] sm:$0xff] (%p4134_p4), %v3292_v19  ;;  %3295 = vst [vmem:[%s3250_s16 + $0x10] sm:$0xff] (%p4134_p4), %v3294_v8 }
0x22dc   : > { %4010 = vtanh.f32 %v2914_v20 }
0x22e6   : > { %v4011_v21 = vpop.eup %4010 }
0x22e7   : > { %2917 = vrot.lane.b32.xlu0 %v4011_v21, %s4067_s30  ;;  %v3298_v21 = vld [vmem:[%s4485_s13 + $0x18] sm:$0xff] (%p4134_p4) }
0x22e8   : > { %3299 = vst [vmem:[%s3250_s16 + $0x30] sm:$0xff] (%p4134_p4), %v3298_v21 }
0x2359   : > { %v2918_v22 = vpop.permute.xlu0 %2917 }
0x235a   : > { %v2920_v23 = vmul.f32 %v4009_v16, %v2918_v22 }
0x235c   : > { %2922 = vrot.lane.b32.xlu1 %v2920_v23, %s4068_s10 }
0x23ce   : > { %v2923_v24 = vpop.permute.xlu1 %2922 }
0x23cf   : > { %3414 = vst.msk [vmem:[%s4485_s13 + $0x20] sm:$0xff] %vm279_vm1, %v2923_v24  ;;  %3767 = vmatmul.mubr.msk.f32.vlgmr.msra.gmra.mrb[38].mxu0 %vm279_vm1, %v2923_v24 }
0x23d0   : > { %3775 = vmatpush3.msra.mxu0 %v4375_v54  ;;  %3776 = vmatprep.mubr.msk.f32.mxu0 %vm4062_vm0, %v4061_v5 }
0x23d6   : > { %v3300_v22 = vld [vmem:[%s4485_s13 + $0x20] sm:$0xff] (%p4134_p4) }
0x23d7   : > { %3301 = vst [vmem:[%s3250_s16 + $0x40] sm:$0xff] (%p4134_p4), %v3300_v22 }
0x24a2   : > { %v2997_v27 = vpop.f32.mrb[38].mxu0 }
0x24a3   : > { %v3001_v31 = vadd.f32 %v2997_v27, %v2928_v26  ;;  %v3768_v33 = vpop.f32.mrb[39].mxu0 }
0x24a5   : > { %4012 = vtanh.f32 %v3001_v31  ;;  %v3416_v35 = vmul.f32 -1.442695, %v3001_v31 }
0x24a7   : > { %4014 = vpow2.f32 %v3416_v35 }
0x24af   : > { %v4013_v34 = vpop.eup %4012 }
0x24b0   : > { %3011 = vrot.lane.b32.xlu0 %v4013_v34, %s4066_s29 }
0x24b1   : > { %v4015_v36 = vpop.eup %4014 }
0x24b2   : > { %v3005_v37 = vadd.f32 1.0, %v4015_v36 }
0x24b4   : > { %4016 = vrcp.f32 %v3005_v37 }
0x24be   : > { %v4017_v54 = vpop.eup %4016 }
0x24bf   : > { %v3009_v5 = vmul.f32 %v4017_v54, %v2914_v20  ;;  %v3296_v20 = vld [vmem:[%s4485_s13 + $0x10] sm:$0xff] (%p4134_p4) }
0x24c0   : > { %3297 = vst [vmem:[%s3250_s16 + $0x20] sm:$0xff] (%p4134_p4), %v3296_v20 }
0x2522   : > { %v3012_v38 = vpop.permute.xlu0 %3011 }
0x2523   : > { %v3014_v39 = vmul.f32 %v4017_v54, %v3012_v38 }
0x2525   : > { %3016 = vrot.lane.b32.xlu1 %v3014_v39, %s4067_s30 }
0x2597   : > { %v3017_v12 = vpop.permute.xlu1 %3016 }
0x2598   : > { %v3019_v40 = vadd.f32 %v3017_v12, %v3009_v5 }
0x259a   : > { %4018 = vtanh.f32 %v3019_v40 }
0x25a4   : > { %v4019_v41 = vpop.eup %4018 }
0x25a5   : > { %3022 = vrot.lane.b32.xlu0 %v4019_v41, %s4067_s30 }
0x2617   : > { %v3023_v42 = vpop.permute.xlu0 %3022 }
0x2618   : > { %v3025_v43 = vmul.f32 %v4017_v54, %v3023_v42 }
0x261a   : > { %3027 = vrot.lane.b32.xlu1 %v3025_v43, %s4068_s10 }
0x268c   : > { %v3028_v44 = vpop.permute.xlu1 %3027 }
0x268d   : > { %3417 = vst.msk [vmem:[%s4485_s13 + $0x28] sm:$0xff] %vm279_vm1, %v3028_v44  ;;  %3772 = vmatmul.mubr.msk.f32.vlgmr.msra.gmra.mrb[22].mxu1 %vm279_vm1, %v3028_v44 }
0x2694   : > { %v3302_v23 = vld [vmem:[%s4485_s13 + $0x28] sm:$0xff] (%p4134_p4) }
0x2695   : > { %3303 = vst [vmem:[%s3250_s16 + $0x50] sm:$0xff] (%p4134_p4), %v3302_v23 }
0x2760   : > { %v3102_v53 = vpop.f32.mrb[22].mxu1 }
0x2761   : > { %v3106_v10 = vadd.f32 %v3102_v53, %v3033_v32  ;;  %v3773_v28 = vpop.f32.mrb[23].mxu1 }
0x2763   : > { %4020 = vtanh.f32 %v3106_v10  ;;  %v3419_v11 = vmul.f32 -1.442695, %v3106_v10 }
0x2765   : > { %4022 = vpow2.f32 %v3419_v11 }
0x276d   : > { %v4021_v46 = vpop.eup %4020 }
0x276e   : > { %3116 = vrot.lane.b32.xlu0 %v4021_v46, %s4066_s29 }
0x276f   : > { %v4023_v30 = vpop.eup %4022 }
0x2770   : > { %v3110_v47 = vadd.f32 1.0, %v4023_v30 }
0x2772   : > { %4024 = vrcp.f32 %v3110_v47 }
0x277c   : > { %v4025_v48 = vpop.eup %4024 }
0x277d   : > { %v3114_v52 = vmul.f32 %v4025_v48, %v3019_v40 }
0x27e0   : > { %v3117_v49 = vpop.permute.xlu0 %3116 }
0x27e1   : > { %v3119_v50 = vmul.f32 %v4025_v48, %v3117_v49 }
0x27e3   : > { %3121 = vrot.lane.b32.xlu1 %v3119_v50, %s4067_s30 }
0x2855   : > { %v3122_v55 = vpop.permute.xlu1 %3121 }
0x2856   : > { %v3124_v56 = vadd.f32 %v3122_v55, %v3114_v52 }
0x2858   : > { %4026 = vtanh.f32 %v3124_v56 }
0x2862   : > { %v4027_v57 = vpop.eup %4026 }
0x2863   : > { %3127 = vrot.lane.b32.xlu0 %v4027_v57, %s4067_s30 }
0x28d5   : > { %v3128_v58 = vpop.permute.xlu0 %3127 }
0x28d6   : > { %v3130_v59 = vmul.f32 %v4025_v48, %v3128_v58 }
0x28d8   : > { %3132 = vrot.lane.b32.xlu1 %v3130_v59, %s4068_s10 }
0x294a   : > { %v3133_v3 = vpop.permute.xlu1 %3132 }
0x294b   : > { %3420 = vst.msk [vmem:[%s4485_s13 + $0x30] sm:$0xff] %vm279_vm1, %v3133_v3  ;;  %3777 = vmatmul.mubr.msk.f32.vlgmr.msra.gmra.mrb[40].mxu0 %vm279_vm1, %v3133_v3 }
0x2952   : > { %v3304_v24 = vld [vmem:[%s4485_s13 + $0x30] sm:$0xff] (%p4134_p4) }
0x2953   : > { %3305 = vst [vmem:[%s3250_s16 + $0x60] sm:$0xff] (%p4134_p4), %v3304_v24 }
0x2a1e   : > { %v3207_v62 = vpop.f32.mrb[40].mxu0 }
0x2a1f   : > { %v3211_v63 = vadd.f32 %v3207_v62, %v3138_v60  ;;  %v3778_v0 = vpop.f32.mrb[41].mxu0 }
0x2a21   : > { %4028 = vtanh.f32 %v3211_v63  ;;  %v3422_v1 = vmul.f32 -1.442695, %v3211_v63 }
0x2a23   : > { %4030 = vpow2.f32 %v3422_v1 }
0x2a2b   : > { %v4029_v61 = vpop.eup %4028 }
0x2a2c   : > { %3221 = vrot.lane.b32.xlu0 %v4029_v61, %s4066_s29 }
0x2a2d   : > { %v4031_v2 = vpop.eup %4030 }
0x2a2e   : > { %v3215_v6 = vadd.f32 1.0, %v4031_v2 }
0x2a30   : > { %4032 = vrcp.f32 %v3215_v6 }
0x2a3a   : > { %v4033_v7 = vpop.eup %4032 }
0x2a3b   : > { %v3219_v14 = vmul.f32 %v4033_v7, %v3124_v56 }
0x2a9e   : > { %v3222_v9 = vpop.permute.xlu0 %3221 }
0x2a9f   : > { %v3224_v13 = vmul.f32 %v4033_v7, %v3222_v9 }
0x2aa1   : > { %3226 = vrot.lane.b32.xlu1 %v3224_v13, %s4067_s30 }
0x2b13   : > { %v3227_v51 = vpop.permute.xlu1 %3226 }
0x2b14   : > { %v3229_v15 = vadd.f32 %v3227_v51, %v3219_v14 }
0x2b16   : > { %4034 = vtanh.f32 %v3229_v15 }
0x2b20   : > { %v4035_v4 = vpop.eup %4034 }
0x2b21   : > { %3232 = vrot.lane.b32.xlu0 %v4035_v4, %s4067_s30 }
0x2b93   : > { %v3233_v16 = vpop.permute.xlu0 %3232 }
0x2b94   : > { %v3235_v17 = vmul.f32 %v4033_v7, %v3233_v16 }
0x2b96   : > { %3237 = vrot.lane.b32.xlu1 %v3235_v17, %s4068_s10 }
0x2c03   : > { %3248 = sbr.rel (!%p4134_p4) target bundleno = 11282 (0x2c12), region = 52 }
0x2c08   : > { %v3238_v18 = vpop.permute.xlu1 %3237 }
0x2c09   : > { %3423 = vst.msk [vmem:[%s4485_s13 + $0x38] sm:$0xff] %vm279_vm1, %v3238_v18 }
0x2c10   : > { %v3306_v25 = vld [vmem:[%s4485_s13 + $0x38] sm:$0xff] }
0x2c11   : > { %3307 = vst [vmem:[%s3250_s16 + $0x70] sm:$0xff] %v3306_v25 }
0x2c12 PF: > { %p14_p8 = scmp.ge.s32.totalorder %s4124_s28, 4   ;;  %s4596_s24 = smov %s4054_s25 }
0x2c13   : > { %s4597_s25 = smov %s4132_s8  ;;  %s4598_s26 = smov %s4124_s28 }
0x2c14   :  { %16 = sbr.rel (!%p14_p8) target bundleno = 2 (0x2), region = 130 }

</bundles_post_ra>
